<compile_context>
chip_gen: v7x
topology: tpu7x:2x2x1
jax: 0.10.0
libtpu: 0.0.40
codegen_flags: <defaults>
</compile_context>

<pallas_src>
import functools

import jax
import jax.numpy as jnp
import numpy as np
from jax.experimental import pallas as pl
from jax.experimental.pallas import tpu as pltpu


# ----------------------------- config (matches the PyTorch module) -----------------------------

CFG = dict(
    char_vocabulary_size=40,
    char_embedding_dim=8,
    char_padding_idx=0,
    char_convolutional_filter_numbers=[8, 8],
    char_convolutional_filter_sizes=[2, 3],
    lstm_layers=2,
    lstm_dim=32,
    dropout_prob=0.1,
    word_vocabulary_size=50,
)


def _pad8(n):
    return ((n + 7) // 8) * 8


def _lstm_slab_layout(Fsum, H, n_layers):
    """Row layout of the packed LSTM+logits weight slab (all sections 8-row aligned)."""
    offs = {}
    r = 0

    def add(name, rows):
        nonlocal r
        offs[name] = (r, rows)
        r += _pad8(rows)

    add("wih0", Fsum)                 # (Fsum, 4H)   layer-0 input projection (hoisted)
    add("whh0", H)                    # (H, 4H)      layer-0 recurrent
    for l in range(1, n_layers):
        add(f"w{l}", 2 * H)           # (2H, 4H)     fused [Wih; Whh] for layer l
    for l in range(n_layers):
        add(f"b{l}", 1)               # (1, 4H)      folded bih+bhh
    add("wlog", H)                    # (H, V_pad)
    add("blog", 1)                    # (1, V_pad)
    return offs, r


# ----------------------------- fused Pallas kernel ------------------------------

def make_fused_kernel(*, B, S, L, E, H, n_layers, Fsum, P_max, V_pad, offs):
    N = S * B                         # total tokens, seq-major (row = s*B + b)
    G = 4 * H
    KE = L * E
    bias_row = _pad8(KE)

    def kernel(e_ref, conv_ref, w_ref, out_ref):
        # ---------------- char CNN: single block-Toeplitz MXU matmul ----------------
        g = (jnp.dot(e_ref[...], conv_ref[0:KE, :],
                     preferred_element_type=jnp.float32)
             + conv_ref[bias_row:bias_row + 1, :])              # (N, P_max*Fsum)
        # max over char positions (lane groups of Fsum); (pos, bank) combos invalid
        # for a filter width carry a -1e30 bias so they never win the max.
        acc = g[:, 0:Fsum]
        for p in range(1, P_max):
            acc = jnp.maximum(acc, g[:, p * Fsum:(p + 1) * Fsum])
        feat = jnp.tanh(acc)          # tanh-after-max == max-after-tanh (monotone)

        # ---------------- LSTM weights: static sublane slices of one slab -----------
        def rows(name):
            s, n = offs[name]
            return w_ref[s:s + n, :]

        wih0 = rows("wih0")[:, :G]
        whh0 = rows("whh0")[:, :G]
        b0 = rows("b0")[:, :G]
        w_l = [rows(f"w{l}")[:, :G] for l in range(1, n_layers)]
        b_l = [rows(f"b{l}")[:, :G] for l in range(1, n_layers)]

        # layer-0 input projection hoisted out of the recurrence (all S*B rows at once).
        z0 = jnp.dot(feat, wih0, preferred_element_type=jnp.float32) + b0   # (N, 4H)

        # single-tanh gate activation constants: sigmoid(x) = 0.5*tanh(0.5*x) + 0.5
        lane = jax.lax.broadcasted_iota(jnp.int32, (1, G), 1)
        is_g = (lane >= 2 * H) & (lane < 3 * H)                 # the tanh ('g') gate lanes
        pre = jnp.where(is_g, 1.0, 0.5)                         # also the post-scale
        shift = jnp.where(is_g, 0.0, 0.5)

        def cell(gates, c):
            act = jnp.tanh(gates * pre) * pre + shift           # ONE EUP pass over (B, 4H)
            i_g = act[:, 0:H]
            f_g = act[:, H:2 * H]
            g_g = act[:, 2 * H:3 * H]
            o_g = act[:, 3 * H:4 * H]
            c_new = f_g * c + i_g * g_g
            h_new = o_g * jnp.tanh(c_new)
            return h_new, c_new

        hs = [jnp.zeros((B, H), jnp.float32) for _ in range(n_layers)]
        cs = [jnp.zeros((B, H), jnp.float32) for _ in range(n_layers)]
        for t in range(S):                                      # S=8: static unroll
            # layer 0: only the recurrent matmul sits on the serial chain.
            g0 = z0[t * B:(t + 1) * B, :] + jnp.dot(
                hs[0], whh0, preferred_element_type=jnp.float32)
            hs[0], cs[0] = cell(g0, cs[0])
            x = hs[0]
            for l in range(1, n_layers):
                # TODO(synk): inter-layer LSTM dropout treated as identity (inference mode).
                xh = jnp.concatenate([x, hs[l]], axis=1)        # (B, 2H) fused [x | h]
                gl = jnp.dot(xh, w_l[l - 1],
                             preferred_element_type=jnp.float32) + b_l[l - 1]
                hs[l], cs[l] = cell(gl, cs[l])
                x = hs[l]

        # ---------------- logits (lane-dense padded output) ----------------------
        # TODO(synk): output dropout treated as identity (inference mode).
        wlog = rows("wlog")[:, :V_pad]
        blog = rows("blog")[:, :V_pad]
        out_ref[...] = (jnp.dot(hs[n_layers - 1], wlog,
                                preferred_element_type=jnp.float32) + blog)

    return kernel


# ------------------------------ parameter init (mirrors the torch module) ------------------------------

def init_params(key, cfg):
    ks = jax.random.split(key, 16)
    E = cfg["char_embedding_dim"]
    H = cfg["lstm_dim"]
    params = {}

    emb = 0.1 * jax.random.normal(ks[0], (cfg["char_vocabulary_size"], E), jnp.float32)
    emb = emb.at[cfg["char_padding_idx"]].set(0.0)   # mimic nn.Embedding padding_idx row
    params["char_embedding"] = emb

    convs = []
    for i, (nf, sz) in enumerate(zip(cfg["char_convolutional_filter_numbers"],
                                     cfg["char_convolutional_filter_sizes"])):
        w = 0.1 * jax.random.normal(ks[1 + i], (nf, E, sz), jnp.float32)   # (F, E, ks)
        b = 0.01 * jax.random.normal(ks[5 + i], (nf,), jnp.float32)
        convs.append((w, b))
    params["convs"] = convs

    fsum = sum(cfg["char_convolutional_filter_numbers"])
    lstm = []
    for l in range(cfg["lstm_layers"]):
        d_in = fsum if l == 0 else H
        wih = 0.1 * jax.random.normal(ks[8 + l], (4 * H, d_in), jnp.float32)
        whh = 0.1 * jax.random.normal(ks[10 + l], (4 * H, H), jnp.float32)
        bih = 0.01 * jax.random.normal(ks[12 + l], (4 * H,), jnp.float32)
        bhh = 0.01 * jax.random.normal(ks[14 + l], (4 * H,), jnp.float32)
        lstm.append((wih, whh, bih, bhh))
    params["lstm"] = lstm

    params["logits_w"] = 0.1 * jax.random.normal(ks[7], (cfg["word_vocabulary_size"], H),
                                                 jnp.float32)
    params["logits_b"] = 0.01 * jax.random.normal(ks[3], (cfg["word_vocabulary_size"],),
                                                  jnp.float32)
    return params


# ------------------------------ one-time host-side weight prep (hoisted out of jit) ----------------------

def prepare_weights(params, cfg, char_len):
    E = cfg["char_embedding_dim"]
    H = cfg["lstm_dim"]
    V = cfg["word_vocabulary_size"]
    filt_nums = cfg["char_convolutional_filter_numbers"]
    filt_sizes = cfg["char_convolutional_filter_sizes"]
    n_layers = cfg["lstm_layers"]
    L = char_len
    Fsum = int(sum(filt_nums))
    P_max = L - min(filt_sizes) + 1
    bank_off = [0] + list(np.cumsum(filt_nums).astype(int))
    V_pad = ((V + 127) // 128) * 128
    G = 4 * H

    # --- block-Toeplitz conv weight (L*E, P_max*Fsum) + bias row --------------------------------
    bias_row = _pad8(L * E)
    conv = np.zeros((bias_row + 8, P_max * Fsum), np.float32)
    conv[bias_row, :] = -1e30                       # default: position invalid for this bank
    for bi, ((w, b), ksz) in enumerate(zip(params["convs"], filt_sizes)):
        w = np.asarray(w)                           # (F, E, ks)
        b = np.asarray(b)                           # (F,)
        F = w.shape[0]
        wt = np.transpose(w, (2, 1, 0)).reshape(ksz * E, F)   # row k*E+j = w[f, j, k]
        off = int(bank_off[bi])
        for p in range(L - ksz + 1):                # valid positions for this filter width
            conv[p * E:p * E + ksz * E, p * Fsum + off:p * Fsum + off + F] = wt
            conv[bias_row, p * Fsum + off:p * Fsum + off + F] = b

    # --- packed LSTM + logits slab ----------------------------------------------------------------
    offs, rows = _lstm_slab_layout(Fsum, H, n_layers)
    width = max(G, V_pad)
    slab = np.zeros((rows, width), np.float32)

    def put(name, mat):
        s, n = offs[name]
        mat = np.asarray(mat, np.float32)
        slab[s:s + n, :mat.shape[1]] = mat

    wih0, whh0, bih0, bhh0 = params["lstm"][0]
    put("wih0", np.asarray(wih0).T)
    put("whh0", np.asarray(whh0).T)
    put("b0", (np.asarray(bih0) + np.asarray(bhh0)).reshape(1, G))
    for l in range(1, n_layers):
        wih, whh, bih, bhh = params["lstm"][l]
        put(f"w{l}", np.concatenate([np.asarray(wih).T, np.asarray(whh).T], axis=0))
        put(f"b{l}", (np.asarray(bih) + np.asarray(bhh)).reshape(1, G))
    put("wlog", np.asarray(params["logits_w"]).T)   # (H, V), lanes V..V_pad stay zero
    put("blog", np.asarray(params["logits_b"]).reshape(1, V))

    emb = jnp.asarray(params["char_embedding"], jnp.float32)
    return emb, jnp.asarray(conv), jnp.asarray(slab)


# ------------------------------ forward wrapper ------------------------------

def lstm_char_lm_forward(emb, conv_slab, lstm_slab, x_idx, *, cfg):
    B, S, L = x_idx.shape
    E = cfg["char_embedding_dim"]
    H = cfg["lstm_dim"]
    V = cfg["word_vocabulary_size"]
    filt_nums = cfg["char_convolutional_filter_numbers"]
    filt_sizes = cfg["char_convolutional_filter_sizes"]
    n_layers = cfg["lstm_layers"]
    Fsum = int(sum(filt_nums))
    P_max = L - min(filt_sizes) + 1
    V_pad = ((V + 127) // 128) * 128
    N = S * B
    offs, _ = _lstm_slab_layout(Fsum, H, n_layers)

    # TODO(synk): char-embedding gather stays as jnp.take in the wrapper — a data-dependent
    # gather has no cheaper Pallas-TPU form at this size (could be a one-hot MXU matmul).
    tok = x_idx.transpose(1, 0, 2).reshape(N * L)             # seq-major: row = s*B + b
    e2d = jnp.take(emb, tok, axis=0).reshape(N, L * E)        # (N, L*E) f32

    kernel = make_fused_kernel(B=B, S=S, L=L, E=E, H=H, n_layers=n_layers,
                               Fsum=Fsum, P_max=P_max, V_pad=V_pad, offs=offs)
    vmem = pl.BlockSpec(memory_space=pltpu.MemorySpace.VMEM)
    out = pl.pallas_call(
        kernel,
        out_shape=jax.ShapeDtypeStruct((B, V_pad), jnp.float32),
        in_specs=[vmem, vmem, vmem],
        out_specs=vmem,
    )(e2d, conv_slab, lstm_slab)
    return out[:, :V]


if __name__ == "__main__":
    key = jax.random.PRNGKey(0)
    k_param, k_data = jax.random.split(key)

    params = init_params(k_param, CFG)

    B, S, L = 2, 8, 12
    x_idx = jax.random.randint(k_data, (B, S, L), 0, CFG["char_vocabulary_size"],
                               dtype=jnp.int32)

    # one-time weight preparation, hoisted out of the jitted hot path
    emb, conv_slab, lstm_slab = prepare_weights(params, CFG, L)

    fwd = jax.jit(functools.partial(lstm_char_lm_forward, cfg=CFG))
    out = fwd(emb, conv_slab, lstm_slab, x_idx)
    out = jax.block_until_ready(out)
    assert out.shape == (B, CFG["word_vocabulary_size"]), out.shape
    assert jnp.all(jnp.isfinite(out))
    print("KERNEL_OK")
</pallas_src>

<mosaic_0001>
module attributes {stable_mosaic.version = 11 : i64} {
  func.func @kernel(%arg0: memref<16x96xf32, #tpu.memory_space<vmem>>, %arg1: memref<104x176xf32, #tpu.memory_space<vmem>>, %arg2: memref<168x128xf32, #tpu.memory_space<vmem>>, %arg3: memref<2x128xf32, #tpu.memory_space<vmem>>) attributes {dimension_semantics = [], scalar_prefetch = 0 : i64, scratch_operands = 0 : i64, tpu.core_type = #tpu.core_type<tc>} {
    %c0 = arith.constant 0 : index
    %c0_0 = arith.constant 0 : index
    %0 = vector.load %arg0[%c0, %c0_0] : memref<16x96xf32, #tpu.memory_space<vmem>>, vector<16x96xf32>
    %c0_1 = arith.constant 0 : index
    %c0_2 = arith.constant 0 : index
    %1 = vector.load %arg1[%c0_1, %c0_2] : memref<104x176xf32, #tpu.memory_space<vmem>>, vector<96x176xf32>
    %cst = arith.constant dense<0.000000e+00> : vector<16x176xf32>
    %2 = tpu.matmul %0, %1, %cst {dimension_numbers = #tpu.dot_dimension_numbers<[1], [0], [0], [1], [0, 0, 1, 1], [], []>} : vector<16x96xf32>, vector<96x176xf32>, vector<16x176xf32> -> vector<16x176xf32>
    %c96 = arith.constant 96 : index
    %c0_3 = arith.constant 0 : index
    %3 = vector.load %arg1[%c96, %c0_3] : memref<104x176xf32, #tpu.memory_space<vmem>>, vector<1x176xf32>
    %4 = vector.broadcast %3 : vector<1x176xf32> to vector<16x176xf32>
    %5 = arith.addf %2, %4 : vector<16x176xf32>
    %6 = vector.extract_strided_slice %5 {offsets = [0, 0], sizes = [16, 16], strides = [1, 1]} : vector<16x176xf32> to vector<16x16xf32>
    %7 = vector.extract_strided_slice %5 {offsets = [0, 16], sizes = [16, 16], strides = [1, 1]} : vector<16x176xf32> to vector<16x16xf32>
    %8 = arith.maximumf %6, %7 : vector<16x16xf32>
    %9 = vector.extract_strided_slice %5 {offsets = [0, 32], sizes = [16, 16], strides = [1, 1]} : vector<16x176xf32> to vector<16x16xf32>
    %10 = arith.maximumf %8, %9 : vector<16x16xf32>
    %11 = vector.extract_strided_slice %5 {offsets = [0, 48], sizes = [16, 16], strides = [1, 1]} : vector<16x176xf32> to vector<16x16xf32>
    %12 = arith.maximumf %10, %11 : vector<16x16xf32>
    %13 = vector.extract_strided_slice %5 {offsets = [0, 64], sizes = [16, 16], strides = [1, 1]} : vector<16x176xf32> to vector<16x16xf32>
    %14 = arith.maximumf %12, %13 : vector<16x16xf32>
    %15 = vector.extract_strided_slice %5 {offsets = [0, 80], sizes = [16, 16], strides = [1, 1]} : vector<16x176xf32> to vector<16x16xf32>
    %16 = arith.maximumf %14, %15 : vector<16x16xf32>
    %17 = vector.extract_strided_slice %5 {offsets = [0, 96], sizes = [16, 16], strides = [1, 1]} : vector<16x176xf32> to vector<16x16xf32>
    %18 = arith.maximumf %16, %17 : vector<16x16xf32>
    %19 = vector.extract_strided_slice %5 {offsets = [0, 112], sizes = [16, 16], strides = [1, 1]} : vector<16x176xf32> to vector<16x16xf32>
    %20 = arith.maximumf %18, %19 : vector<16x16xf32>
    %21 = vector.extract_strided_slice %5 {offsets = [0, 128], sizes = [16, 16], strides = [1, 1]} : vector<16x176xf32> to vector<16x16xf32>
    %22 = arith.maximumf %20, %21 : vector<16x16xf32>
    %23 = vector.extract_strided_slice %5 {offsets = [0, 144], sizes = [16, 16], strides = [1, 1]} : vector<16x176xf32> to vector<16x16xf32>
    %24 = arith.maximumf %22, %23 : vector<16x16xf32>
    %25 = vector.extract_strided_slice %5 {offsets = [0, 160], sizes = [16, 16], strides = [1, 1]} : vector<16x176xf32> to vector<16x16xf32>
    %26 = arith.maximumf %24, %25 : vector<16x16xf32>
    %27 = math.tanh %26 : vector<16x16xf32>
    %c0_4 = arith.constant 0 : index
    %c0_5 = arith.constant 0 : index
    %28 = vector.load %arg2[%c0_4, %c0_5] : memref<168x128xf32, #tpu.memory_space<vmem>>, vector<16x128xf32>
    %c16 = arith.constant 16 : index
    %c0_6 = arith.constant 0 : index
    %29 = vector.load %arg2[%c16, %c0_6] : memref<168x128xf32, #tpu.memory_space<vmem>>, vector<32x128xf32>
    %c112 = arith.constant 112 : index
    %c0_7 = arith.constant 0 : index
    %30 = vector.load %arg2[%c112, %c0_7] : memref<168x128xf32, #tpu.memory_space<vmem>>, vector<1x128xf32>
    %c48 = arith.constant 48 : index
    %c0_8 = arith.constant 0 : index
    %31 = vector.load %arg2[%c48, %c0_8] : memref<168x128xf32, #tpu.memory_space<vmem>>, vector<64x128xf32>
    %c120 = arith.constant 120 : index
    %c0_9 = arith.constant 0 : index
    %32 = vector.load %arg2[%c120, %c0_9] : memref<168x128xf32, #tpu.memory_space<vmem>>, vector<1x128xf32>
    %cst_10 = arith.constant dense<0.000000e+00> : vector<16x128xf32>
    %33 = tpu.matmul %27, %28, %cst_10 {dimension_numbers = #tpu.dot_dimension_numbers<[1], [0], [0], [1], [0, 0, 1, 1], [], []>} : vector<16x16xf32>, vector<16x128xf32>, vector<16x128xf32> -> vector<16x128xf32>
    %34 = vector.broadcast %30 : vector<1x128xf32> to vector<16x128xf32>
    %35 = arith.addf %33, %34 : vector<16x128xf32>
    %36 = tpu.iota {dimensions = array<i32: 1>} : vector<1x128xi32>
    %c64_i32 = arith.constant 64 : i32
    %37 = vector.broadcast %c64_i32 : i32 to vector<1x128xi32>
    %38 = arith.cmpi sge, %36, %37 : vector<1x128xi32>
    %c96_i32 = arith.constant 96 : i32
    %39 = vector.broadcast %c96_i32 : i32 to vector<1x128xi32>
    %40 = arith.cmpi slt, %36, %39 : vector<1x128xi32>
    %41 = arith.andi %38, %40 : vector<1x128xi1>
    %cst_11 = arith.constant 1.000000e+00 : f32
    %cst_12 = arith.constant 5.000000e-01 : f32
    %42 = vector.broadcast %cst_11 : f32 to vector<1x128xf32>
    %43 = vector.broadcast %cst_12 : f32 to vector<1x128xf32>
    %44 = arith.select %41, %42, %43 : vector<1x128xi1>, vector<1x128xf32>
    %cst_13 = arith.constant 0.000000e+00 : f32
    %cst_14 = arith.constant 5.000000e-01 : f32
    %45 = vector.broadcast %cst_13 : f32 to vector<1x128xf32>
    %46 = vector.broadcast %cst_14 : f32 to vector<1x128xf32>
    %47 = arith.select %41, %45, %46 : vector<1x128xi1>, vector<1x128xf32>
    %cst_15 = arith.constant 0.000000e+00 : f32
    %48 = vector.broadcast %cst_15 : f32 to vector<2x32xf32>
    %cst_16 = arith.constant 0.000000e+00 : f32
    %49 = vector.broadcast %cst_16 : f32 to vector<2x32xf32>
    %cst_17 = arith.constant 0.000000e+00 : f32
    %50 = vector.broadcast %cst_17 : f32 to vector<2x32xf32>
    %cst_18 = arith.constant 0.000000e+00 : f32
    %51 = vector.broadcast %cst_18 : f32 to vector<2x32xf32>
    %52 = vector.extract_strided_slice %35 {offsets = [0, 0], sizes = [2, 128], strides = [1, 1]} : vector<16x128xf32> to vector<2x128xf32>
    %cst_19 = arith.constant dense<0.000000e+00> : vector<2x128xf32>
    %53 = tpu.matmul %48, %29, %cst_19 {dimension_numbers = #tpu.dot_dimension_numbers<[1], [0], [0], [1], [0, 0, 1, 1], [], []>} : vector<2x32xf32>, vector<32x128xf32>, vector<2x128xf32> -> vector<2x128xf32>
    %54 = arith.addf %52, %53 : vector<2x128xf32>
    %55 = vector.broadcast %44 : vector<1x128xf32> to vector<2x128xf32>
    %56 = arith.mulf %54, %55 : vector<2x128xf32>
    %57 = math.tanh %56 : vector<2x128xf32>
    %58 = vector.broadcast %44 : vector<1x128xf32> to vector<2x128xf32>
    %59 = arith.mulf %57, %58 : vector<2x128xf32>
    %60 = vector.broadcast %47 : vector<1x128xf32> to vector<2x128xf32>
    %61 = arith.addf %59, %60 : vector<2x128xf32>
    %62 = vector.extract_strided_slice %61 {offsets = [0, 0], sizes = [2, 32], strides = [1, 1]} : vector<2x128xf32> to vector<2x32xf32>
    %63 = vector.extract_strided_slice %61 {offsets = [0, 32], sizes = [2, 32], strides = [1, 1]} : vector<2x128xf32> to vector<2x32xf32>
    %64 = vector.extract_strided_slice %61 {offsets = [0, 64], sizes = [2, 32], strides = [1, 1]} : vector<2x128xf32> to vector<2x32xf32>
    %65 = vector.extract_strided_slice %61 {offsets = [0, 96], sizes = [2, 32], strides = [1, 1]} : vector<2x128xf32> to vector<2x32xf32>
    %66 = arith.mulf %63, %50 : vector<2x32xf32>
    %67 = arith.mulf %62, %64 : vector<2x32xf32>
    %68 = arith.addf %66, %67 : vector<2x32xf32>
    %69 = math.tanh %68 : vector<2x32xf32>
    %70 = arith.mulf %65, %69 : vector<2x32xf32>
    %71 = tpu.concatenate %70, %49 in 1 : vector<2x32xf32>, vector<2x32xf32> -> vector<2x64xf32>
    %cst_20 = arith.constant dense<0.000000e+00> : vector<2x128xf32>
    %72 = tpu.matmul %71, %31, %cst_20 {dimension_numbers = #tpu.dot_dimension_numbers<[1], [0], [0], [1], [0, 0, 1, 1], [], []>} : vector<2x64xf32>, vector<64x128xf32>, vector<2x128xf32> -> vector<2x128xf32>
    %73 = vector.broadcast %32 : vector<1x128xf32> to vector<2x128xf32>
    %74 = arith.addf %72, %73 : vector<2x128xf32>
    %75 = vector.broadcast %44 : vector<1x128xf32> to vector<2x128xf32>
    %76 = arith.mulf %74, %75 : vector<2x128xf32>
    %77 = math.tanh %76 : vector<2x128xf32>
    %78 = vector.broadcast %44 : vector<1x128xf32> to vector<2x128xf32>
    %79 = arith.mulf %77, %78 : vector<2x128xf32>
    %80 = vector.broadcast %47 : vector<1x128xf32> to vector<2x128xf32>
    %81 = arith.addf %79, %80 : vector<2x128xf32>
    %82 = vector.extract_strided_slice %81 {offsets = [0, 0], sizes = [2, 32], strides = [1, 1]} : vector<2x128xf32> to vector<2x32xf32>
    %83 = vector.extract_strided_slice %81 {offsets = [0, 32], sizes = [2, 32], strides = [1, 1]} : vector<2x128xf32> to vector<2x32xf32>
    %84 = vector.extract_strided_slice %81 {offsets = [0, 64], sizes = [2, 32], strides = [1, 1]} : vector<2x128xf32> to vector<2x32xf32>
    %85 = vector.extract_strided_slice %81 {offsets = [0, 96], sizes = [2, 32], strides = [1, 1]} : vector<2x128xf32> to vector<2x32xf32>
    %86 = arith.mulf %83, %51 : vector<2x32xf32>
    %87 = arith.mulf %82, %84 : vector<2x32xf32>
    %88 = arith.addf %86, %87 : vector<2x32xf32>
    %89 = math.tanh %88 : vector<2x32xf32>
    %90 = arith.mulf %85, %89 : vector<2x32xf32>
    %91 = vector.extract_strided_slice %35 {offsets = [2, 0], sizes = [2, 128], strides = [1, 1]} : vector<16x128xf32> to vector<2x128xf32>
    %cst_21 = arith.constant dense<0.000000e+00> : vector<2x128xf32>
    %92 = tpu.matmul %70, %29, %cst_21 {dimension_numbers = #tpu.dot_dimension_numbers<[1], [0], [0], [1], [0, 0, 1, 1], [], []>} : vector<2x32xf32>, vector<32x128xf32>, vector<2x128xf32> -> vector<2x128xf32>
    %93 = arith.addf %91, %92 : vector<2x128xf32>
    %94 = vector.broadcast %44 : vector<1x128xf32> to vector<2x128xf32>
    %95 = arith.mulf %93, %94 : vector<2x128xf32>
    %96 = math.tanh %95 : vector<2x128xf32>
    %97 = vector.broadcast %44 : vector<1x128xf32> to vector<2x128xf32>
    %98 = arith.mulf %96, %97 : vector<2x128xf32>
    %99 = vector.broadcast %47 : vector<1x128xf32> to vector<2x128xf32>
    %100 = arith.addf %98, %99 : vector<2x128xf32>
    %101 = vector.extract_strided_slice %100 {offsets = [0, 0], sizes = [2, 32], strides = [1, 1]} : vector<2x128xf32> to vector<2x32xf32>
    %102 = vector.extract_strided_slice %100 {offsets = [0, 32], sizes = [2, 32], strides = [1, 1]} : vector<2x128xf32> to vector<2x32xf32>
    %103 = vector.extract_strided_slice %100 {offsets = [0, 64], sizes = [2, 32], strides = [1, 1]} : vector<2x128xf32> to vector<2x32xf32>
    %104 = vector.extract_strided_slice %100 {offsets = [0, 96], sizes = [2, 32], strides = [1, 1]} : vector<2x128xf32> to vector<2x32xf32>
    %105 = arith.mulf %102, %68 : vector<2x32xf32>
    %106 = arith.mulf %101, %103 : vector<2x32xf32>
    %107 = arith.addf %105, %106 : vector<2x32xf32>
    %108 = math.tanh %107 : vector<2x32xf32>
    %109 = arith.mulf %104, %108 : vector<2x32xf32>
    %110 = tpu.concatenate %109, %90 in 1 : vector<2x32xf32>, vector<2x32xf32> -> vector<2x64xf32>
    %cst_22 = arith.constant dense<0.000000e+00> : vector<2x128xf32>
    %111 = tpu.matmul %110, %31, %cst_22 {dimension_numbers = #tpu.dot_dimension_numbers<[1], [0], [0], [1], [0, 0, 1, 1], [], []>} : vector<2x64xf32>, vector<64x128xf32>, vector<2x128xf32> -> vector<2x128xf32>
    %112 = vector.broadcast %32 : vector<1x128xf32> to vector<2x128xf32>
    %113 = arith.addf %111, %112 : vector<2x128xf32>
    %114 = vector.broadcast %44 : vector<1x128xf32> to vector<2x128xf32>
    %115 = arith.mulf %113, %114 : vector<2x128xf32>
    %116 = math.tanh %115 : vector<2x128xf32>
    %117 = vector.broadcast %44 : vector<1x128xf32> to vector<2x128xf32>
    %118 = arith.mulf %116, %117 : vector<2x128xf32>
    %119 = vector.broadcast %47 : vector<1x128xf32> to vector<2x128xf32>
    %120 = arith.addf %118, %119 : vector<2x128xf32>
    %121 = vector.extract_strided_slice %120 {offsets = [0, 0], sizes = [2, 32], strides = [1, 1]} : vector<2x128xf32> to vector<2x32xf32>
    %122 = vector.extract_strided_slice %120 {offsets = [0, 32], sizes = [2, 32], strides = [1, 1]} : vector<2x128xf32> to vector<2x32xf32>
    %123 = vector.extract_strided_slice %120 {offsets = [0, 64], sizes = [2, 32], strides = [1, 1]} : vector<2x128xf32> to vector<2x32xf32>
    %124 = vector.extract_strided_slice %120 {offsets = [0, 96], sizes = [2, 32], strides = [1, 1]} : vector<2x128xf32> to vector<2x32xf32>
    %125 = arith.mulf %122, %88 : vector<2x32xf32>
    %126 = arith.mulf %121, %123 : vector<2x32xf32>
    %127 = arith.addf %125, %126 : vector<2x32xf32>
    %128 = math.tanh %127 : vector<2x32xf32>
    %129 = arith.mulf %124, %128 : vector<2x32xf32>
    %130 = vector.extract_strided_slice %35 {offsets = [4, 0], sizes = [2, 128], strides = [1, 1]} : vector<16x128xf32> to vector<2x128xf32>
    %cst_23 = arith.constant dense<0.000000e+00> : vector<2x128xf32>
    %131 = tpu.matmul %109, %29, %cst_23 {dimension_numbers = #tpu.dot_dimension_numbers<[1], [0], [0], [1], [0, 0, 1, 1], [], []>} : vector<2x32xf32>, vector<32x128xf32>, vector<2x128xf32> -> vector<2x128xf32>
    %132 = arith.addf %130, %131 : vector<2x128xf32>
    %133 = vector.broadcast %44 : vector<1x128xf32> to vector<2x128xf32>
    %134 = arith.mulf %132, %133 : vector<2x128xf32>
    %135 = math.tanh %134 : vector<2x128xf32>
    %136 = vector.broadcast %44 : vector<1x128xf32> to vector<2x128xf32>
    %137 = arith.mulf %135, %136 : vector<2x128xf32>
    %138 = vector.broadcast %47 : vector<1x128xf32> to vector<2x128xf32>
    %139 = arith.addf %137, %138 : vector<2x128xf32>
    %140 = vector.extract_strided_slice %139 {offsets = [0, 0], sizes = [2, 32], strides = [1, 1]} : vector<2x128xf32> to vector<2x32xf32>
    %141 = vector.extract_strided_slice %139 {offsets = [0, 32], sizes = [2, 32], strides = [1, 1]} : vector<2x128xf32> to vector<2x32xf32>
    %142 = vector.extract_strided_slice %139 {offsets = [0, 64], sizes = [2, 32], strides = [1, 1]} : vector<2x128xf32> to vector<2x32xf32>
    %143 = vector.extract_strided_slice %139 {offsets = [0, 96], sizes = [2, 32], strides = [1, 1]} : vector<2x128xf32> to vector<2x32xf32>
    %144 = arith.mulf %141, %107 : vector<2x32xf32>
    %145 = arith.mulf %140, %142 : vector<2x32xf32>
    %146 = arith.addf %144, %145 : vector<2x32xf32>
    %147 = math.tanh %146 : vector<2x32xf32>
    %148 = arith.mulf %143, %147 : vector<2x32xf32>
    %149 = tpu.concatenate %148, %129 in 1 : vector<2x32xf32>, vector<2x32xf32> -> vector<2x64xf32>
    %cst_24 = arith.constant dense<0.000000e+00> : vector<2x128xf32>
    %150 = tpu.matmul %149, %31, %cst_24 {dimension_numbers = #tpu.dot_dimension_numbers<[1], [0], [0], [1], [0, 0, 1, 1], [], []>} : vector<2x64xf32>, vector<64x128xf32>, vector<2x128xf32> -> vector<2x128xf32>
    %151 = vector.broadcast %32 : vector<1x128xf32> to vector<2x128xf32>
    %152 = arith.addf %150, %151 : vector<2x128xf32>
    %153 = vector.broadcast %44 : vector<1x128xf32> to vector<2x128xf32>
    %154 = arith.mulf %152, %153 : vector<2x128xf32>
    %155 = math.tanh %154 : vector<2x128xf32>
    %156 = vector.broadcast %44 : vector<1x128xf32> to vector<2x128xf32>
    %157 = arith.mulf %155, %156 : vector<2x128xf32>
    %158 = vector.broadcast %47 : vector<1x128xf32> to vector<2x128xf32>
    %159 = arith.addf %157, %158 : vector<2x128xf32>
    %160 = vector.extract_strided_slice %159 {offsets = [0, 0], sizes = [2, 32], strides = [1, 1]} : vector<2x128xf32> to vector<2x32xf32>
    %161 = vector.extract_strided_slice %159 {offsets = [0, 32], sizes = [2, 32], strides = [1, 1]} : vector<2x128xf32> to vector<2x32xf32>
    %162 = vector.extract_strided_slice %159 {offsets = [0, 64], sizes = [2, 32], strides = [1, 1]} : vector<2x128xf32> to vector<2x32xf32>
    %163 = vector.extract_strided_slice %159 {offsets = [0, 96], sizes = [2, 32], strides = [1, 1]} : vector<2x128xf32> to vector<2x32xf32>
    %164 = arith.mulf %161, %127 : vector<2x32xf32>
    %165 = arith.mulf %160, %162 : vector<2x32xf32>
    %166 = arith.addf %164, %165 : vector<2x32xf32>
    %167 = math.tanh %166 : vector<2x32xf32>
    %168 = arith.mulf %163, %167 : vector<2x32xf32>
    %169 = vector.extract_strided_slice %35 {offsets = [6, 0], sizes = [2, 128], strides = [1, 1]} : vector<16x128xf32> to vector<2x128xf32>
    %cst_25 = arith.constant dense<0.000000e+00> : vector<2x128xf32>
    %170 = tpu.matmul %148, %29, %cst_25 {dimension_numbers = #tpu.dot_dimension_numbers<[1], [0], [0], [1], [0, 0, 1, 1], [], []>} : vector<2x32xf32>, vector<32x128xf32>, vector<2x128xf32> -> vector<2x128xf32>
    %171 = arith.addf %169, %170 : vector<2x128xf32>
    %172 = vector.broadcast %44 : vector<1x128xf32> to vector<2x128xf32>
    %173 = arith.mulf %171, %172 : vector<2x128xf32>
    %174 = math.tanh %173 : vector<2x128xf32>
    %175 = vector.broadcast %44 : vector<1x128xf32> to vector<2x128xf32>
    %176 = arith.mulf %174, %175 : vector<2x128xf32>
    %177 = vector.broadcast %47 : vector<1x128xf32> to vector<2x128xf32>
    %178 = arith.addf %176, %177 : vector<2x128xf32>
    %179 = vector.extract_strided_slice %178 {offsets = [0, 0], sizes = [2, 32], strides = [1, 1]} : vector<2x128xf32> to vector<2x32xf32>
    %180 = vector.extract_strided_slice %178 {offsets = [0, 32], sizes = [2, 32], strides = [1, 1]} : vector<2x128xf32> to vector<2x32xf32>
    %181 = vector.extract_strided_slice %178 {offsets = [0, 64], sizes = [2, 32], strides = [1, 1]} : vector<2x128xf32> to vector<2x32xf32>
    %182 = vector.extract_strided_slice %178 {offsets = [0, 96], sizes = [2, 32], strides = [1, 1]} : vector<2x128xf32> to vector<2x32xf32>
    %183 = arith.mulf %180, %146 : vector<2x32xf32>
    %184 = arith.mulf %179, %181 : vector<2x32xf32>
    %185 = arith.addf %183, %184 : vector<2x32xf32>
    %186 = math.tanh %185 : vector<2x32xf32>
    %187 = arith.mulf %182, %186 : vector<2x32xf32>
    %188 = tpu.concatenate %187, %168 in 1 : vector<2x32xf32>, vector<2x32xf32> -> vector<2x64xf32>
    %cst_26 = arith.constant dense<0.000000e+00> : vector<2x128xf32>
    %189 = tpu.matmul %188, %31, %cst_26 {dimension_numbers = #tpu.dot_dimension_numbers<[1], [0], [0], [1], [0, 0, 1, 1], [], []>} : vector<2x64xf32>, vector<64x128xf32>, vector<2x128xf32> -> vector<2x128xf32>
    %190 = vector.broadcast %32 : vector<1x128xf32> to vector<2x128xf32>
    %191 = arith.addf %189, %190 : vector<2x128xf32>
    %192 = vector.broadcast %44 : vector<1x128xf32> to vector<2x128xf32>
    %193 = arith.mulf %191, %192 : vector<2x128xf32>
    %194 = math.tanh %193 : vector<2x128xf32>
    %195 = vector.broadcast %44 : vector<1x128xf32> to vector<2x128xf32>
    %196 = arith.mulf %194, %195 : vector<2x128xf32>
    %197 = vector.broadcast %47 : vector<1x128xf32> to vector<2x128xf32>
    %198 = arith.addf %196, %197 : vector<2x128xf32>
    %199 = vector.extract_strided_slice %198 {offsets = [0, 0], sizes = [2, 32], strides = [1, 1]} : vector<2x128xf32> to vector<2x32xf32>
    %200 = vector.extract_strided_slice %198 {offsets = [0, 32], sizes = [2, 32], strides = [1, 1]} : vector<2x128xf32> to vector<2x32xf32>
    %201 = vector.extract_strided_slice %198 {offsets = [0, 64], sizes = [2, 32], strides = [1, 1]} : vector<2x128xf32> to vector<2x32xf32>
    %202 = vector.extract_strided_slice %198 {offsets = [0, 96], sizes = [2, 32], strides = [1, 1]} : vector<2x128xf32> to vector<2x32xf32>
    %203 = arith.mulf %200, %166 : vector<2x32xf32>
    %204 = arith.mulf %199, %201 : vector<2x32xf32>
    %205 = arith.addf %203, %204 : vector<2x32xf32>
    %206 = math.tanh %205 : vector<2x32xf32>
    %207 = arith.mulf %202, %206 : vector<2x32xf32>
    %208 = vector.extract_strided_slice %35 {offsets = [8, 0], sizes = [2, 128], strides = [1, 1]} : vector<16x128xf32> to vector<2x128xf32>
    %cst_27 = arith.constant dense<0.000000e+00> : vector<2x128xf32>
    %209 = tpu.matmul %187, %29, %cst_27 {dimension_numbers = #tpu.dot_dimension_numbers<[1], [0], [0], [1], [0, 0, 1, 1], [], []>} : vector<2x32xf32>, vector<32x128xf32>, vector<2x128xf32> -> vector<2x128xf32>
    %210 = arith.addf %208, %209 : vector<2x128xf32>
    %211 = vector.broadcast %44 : vector<1x128xf32> to vector<2x128xf32>
    %212 = arith.mulf %210, %211 : vector<2x128xf32>
    %213 = math.tanh %212 : vector<2x128xf32>
    %214 = vector.broadcast %44 : vector<1x128xf32> to vector<2x128xf32>
    %215 = arith.mulf %213, %214 : vector<2x128xf32>
    %216 = vector.broadcast %47 : vector<1x128xf32> to vector<2x128xf32>
    %217 = arith.addf %215, %216 : vector<2x128xf32>
    %218 = vector.extract_strided_slice %217 {offsets = [0, 0], sizes = [2, 32], strides = [1, 1]} : vector<2x128xf32> to vector<2x32xf32>
    %219 = vector.extract_strided_slice %217 {offsets = [0, 32], sizes = [2, 32], strides = [1, 1]} : vector<2x128xf32> to vector<2x32xf32>
    %220 = vector.extract_strided_slice %217 {offsets = [0, 64], sizes = [2, 32], strides = [1, 1]} : vector<2x128xf32> to vector<2x32xf32>
    %221 = vector.extract_strided_slice %217 {offsets = [0, 96], sizes = [2, 32], strides = [1, 1]} : vector<2x128xf32> to vector<2x32xf32>
    %222 = arith.mulf %219, %185 : vector<2x32xf32>
    %223 = arith.mulf %218, %220 : vector<2x32xf32>
    %224 = arith.addf %222, %223 : vector<2x32xf32>
    %225 = math.tanh %224 : vector<2x32xf32>
    %226 = arith.mulf %221, %225 : vector<2x32xf32>
    %227 = tpu.concatenate %226, %207 in 1 : vector<2x32xf32>, vector<2x32xf32> -> vector<2x64xf32>
    %cst_28 = arith.constant dense<0.000000e+00> : vector<2x128xf32>
    %228 = tpu.matmul %227, %31, %cst_28 {dimension_numbers = #tpu.dot_dimension_numbers<[1], [0], [0], [1], [0, 0, 1, 1], [], []>} : vector<2x64xf32>, vector<64x128xf32>, vector<2x128xf32> -> vector<2x128xf32>
    %229 = vector.broadcast %32 : vector<1x128xf32> to vector<2x128xf32>
    %230 = arith.addf %228, %229 : vector<2x128xf32>
    %231 = vector.broadcast %44 : vector<1x128xf32> to vector<2x128xf32>
    %232 = arith.mulf %230, %231 : vector<2x128xf32>
    %233 = math.tanh %232 : vector<2x128xf32>
    %234 = vector.broadcast %44 : vector<1x128xf32> to vector<2x128xf32>
    %235 = arith.mulf %233, %234 : vector<2x128xf32>
    %236 = vector.broadcast %47 : vector<1x128xf32> to vector<2x128xf32>
    %237 = arith.addf %235, %236 : vector<2x128xf32>
    %238 = vector.extract_strided_slice %237 {offsets = [0, 0], sizes = [2, 32], strides = [1, 1]} : vector<2x128xf32> to vector<2x32xf32>
    %239 = vector.extract_strided_slice %237 {offsets = [0, 32], sizes = [2, 32], strides = [1, 1]} : vector<2x128xf32> to vector<2x32xf32>
    %240 = vector.extract_strided_slice %237 {offsets = [0, 64], sizes = [2, 32], strides = [1, 1]} : vector<2x128xf32> to vector<2x32xf32>
    %241 = vector.extract_strided_slice %237 {offsets = [0, 96], sizes = [2, 32], strides = [1, 1]} : vector<2x128xf32> to vector<2x32xf32>
    %242 = arith.mulf %239, %205 : vector<2x32xf32>
    %243 = arith.mulf %238, %240 : vector<2x32xf32>
    %244 = arith.addf %242, %243 : vector<2x32xf32>
    %245 = math.tanh %244 : vector<2x32xf32>
    %246 = arith.mulf %241, %245 : vector<2x32xf32>
    %247 = vector.extract_strided_slice %35 {offsets = [10, 0], sizes = [2, 128], strides = [1, 1]} : vector<16x128xf32> to vector<2x128xf32>
    %cst_29 = arith.constant dense<0.000000e+00> : vector<2x128xf32>
    %248 = tpu.matmul %226, %29, %cst_29 {dimension_numbers = #tpu.dot_dimension_numbers<[1], [0], [0], [1], [0, 0, 1, 1], [], []>} : vector<2x32xf32>, vector<32x128xf32>, vector<2x128xf32> -> vector<2x128xf32>
    %249 = arith.addf %247, %248 : vector<2x128xf32>
    %250 = vector.broadcast %44 : vector<1x128xf32> to vector<2x128xf32>
    %251 = arith.mulf %249, %250 : vector<2x128xf32>
    %252 = math.tanh %251 : vector<2x128xf32>
    %253 = vector.broadcast %44 : vector<1x128xf32> to vector<2x128xf32>
    %254 = arith.mulf %252, %253 : vector<2x128xf32>
    %255 = vector.broadcast %47 : vector<1x128xf32> to vector<2x128xf32>
    %256 = arith.addf %254, %255 : vector<2x128xf32>
    %257 = vector.extract_strided_slice %256 {offsets = [0, 0], sizes = [2, 32], strides = [1, 1]} : vector<2x128xf32> to vector<2x32xf32>
    %258 = vector.extract_strided_slice %256 {offsets = [0, 32], sizes = [2, 32], strides = [1, 1]} : vector<2x128xf32> to vector<2x32xf32>
    %259 = vector.extract_strided_slice %256 {offsets = [0, 64], sizes = [2, 32], strides = [1, 1]} : vector<2x128xf32> to vector<2x32xf32>
    %260 = vector.extract_strided_slice %256 {offsets = [0, 96], sizes = [2, 32], strides = [1, 1]} : vector<2x128xf32> to vector<2x32xf32>
    %261 = arith.mulf %258, %224 : vector<2x32xf32>
    %262 = arith.mulf %257, %259 : vector<2x32xf32>
    %263 = arith.addf %261, %262 : vector<2x32xf32>
    %264 = math.tanh %263 : vector<2x32xf32>
    %265 = arith.mulf %260, %264 : vector<2x32xf32>
    %266 = tpu.concatenate %265, %246 in 1 : vector<2x32xf32>, vector<2x32xf32> -> vector<2x64xf32>
    %cst_30 = arith.constant dense<0.000000e+00> : vector<2x128xf32>
    %267 = tpu.matmul %266, %31, %cst_30 {dimension_numbers = #tpu.dot_dimension_numbers<[1], [0], [0], [1], [0, 0, 1, 1], [], []>} : vector<2x64xf32>, vector<64x128xf32>, vector<2x128xf32> -> vector<2x128xf32>
    %268 = vector.broadcast %32 : vector<1x128xf32> to vector<2x128xf32>
    %269 = arith.addf %267, %268 : vector<2x128xf32>
    %270 = vector.broadcast %44 : vector<1x128xf32> to vector<2x128xf32>
    %271 = arith.mulf %269, %270 : vector<2x128xf32>
    %272 = math.tanh %271 : vector<2x128xf32>
    %273 = vector.broadcast %44 : vector<1x128xf32> to vector<2x128xf32>
    %274 = arith.mulf %272, %273 : vector<2x128xf32>
    %275 = vector.broadcast %47 : vector<1x128xf32> to vector<2x128xf32>
    %276 = arith.addf %274, %275 : vector<2x128xf32>
    %277 = vector.extract_strided_slice %276 {offsets = [0, 0], sizes = [2, 32], strides = [1, 1]} : vector<2x128xf32> to vector<2x32xf32>
    %278 = vector.extract_strided_slice %276 {offsets = [0, 32], sizes = [2, 32], strides = [1, 1]} : vector<2x128xf32> to vector<2x32xf32>
    %279 = vector.extract_strided_slice %276 {offsets = [0, 64], sizes = [2, 32], strides = [1, 1]} : vector<2x128xf32> to vector<2x32xf32>
    %280 = vector.extract_strided_slice %276 {offsets = [0, 96], sizes = [2, 32], strides = [1, 1]} : vector<2x128xf32> to vector<2x32xf32>
    %281 = arith.mulf %278, %244 : vector<2x32xf32>
    %282 = arith.mulf %277, %279 : vector<2x32xf32>
    %283 = arith.addf %281, %282 : vector<2x32xf32>
    %284 = math.tanh %283 : vector<2x32xf32>
    %285 = arith.mulf %280, %284 : vector<2x32xf32>
    %286 = vector.extract_strided_slice %35 {offsets = [12, 0], sizes = [2, 128], strides = [1, 1]} : vector<16x128xf32> to vector<2x128xf32>
    %cst_31 = arith.constant dense<0.000000e+00> : vector<2x128xf32>
    %287 = tpu.matmul %265, %29, %cst_31 {dimension_numbers = #tpu.dot_dimension_numbers<[1], [0], [0], [1], [0, 0, 1, 1], [], []>} : vector<2x32xf32>, vector<32x128xf32>, vector<2x128xf32> -> vector<2x128xf32>
    %288 = arith.addf %286, %287 : vector<2x128xf32>
    %289 = vector.broadcast %44 : vector<1x128xf32> to vector<2x128xf32>
    %290 = arith.mulf %288, %289 : vector<2x128xf32>
    %291 = math.tanh %290 : vector<2x128xf32>
    %292 = vector.broadcast %44 : vector<1x128xf32> to vector<2x128xf32>
    %293 = arith.mulf %291, %292 : vector<2x128xf32>
    %294 = vector.broadcast %47 : vector<1x128xf32> to vector<2x128xf32>
    %295 = arith.addf %293, %294 : vector<2x128xf32>
    %296 = vector.extract_strided_slice %295 {offsets = [0, 0], sizes = [2, 32], strides = [1, 1]} : vector<2x128xf32> to vector<2x32xf32>
    %297 = vector.extract_strided_slice %295 {offsets = [0, 32], sizes = [2, 32], strides = [1, 1]} : vector<2x128xf32> to vector<2x32xf32>
    %298 = vector.extract_strided_slice %295 {offsets = [0, 64], sizes = [2, 32], strides = [1, 1]} : vector<2x128xf32> to vector<2x32xf32>
    %299 = vector.extract_strided_slice %295 {offsets = [0, 96], sizes = [2, 32], strides = [1, 1]} : vector<2x128xf32> to vector<2x32xf32>
    %300 = arith.mulf %297, %263 : vector<2x32xf32>
    %301 = arith.mulf %296, %298 : vector<2x32xf32>
    %302 = arith.addf %300, %301 : vector<2x32xf32>
    %303 = math.tanh %302 : vector<2x32xf32>
    %304 = arith.mulf %299, %303 : vector<2x32xf32>
    %305 = tpu.concatenate %304, %285 in 1 : vector<2x32xf32>, vector<2x32xf32> -> vector<2x64xf32>
    %cst_32 = arith.constant dense<0.000000e+00> : vector<2x128xf32>
    %306 = tpu.matmul %305, %31, %cst_32 {dimension_numbers = #tpu.dot_dimension_numbers<[1], [0], [0], [1], [0, 0, 1, 1], [], []>} : vector<2x64xf32>, vector<64x128xf32>, vector<2x128xf32> -> vector<2x128xf32>
    %307 = vector.broadcast %32 : vector<1x128xf32> to vector<2x128xf32>
    %308 = arith.addf %306, %307 : vector<2x128xf32>
    %309 = vector.broadcast %44 : vector<1x128xf32> to vector<2x128xf32>
    %310 = arith.mulf %308, %309 : vector<2x128xf32>
    %311 = math.tanh %310 : vector<2x128xf32>
    %312 = vector.broadcast %44 : vector<1x128xf32> to vector<2x128xf32>
    %313 = arith.mulf %311, %312 : vector<2x128xf32>
    %314 = vector.broadcast %47 : vector<1x128xf32> to vector<2x128xf32>
    %315 = arith.addf %313, %314 : vector<2x128xf32>
    %316 = vector.extract_strided_slice %315 {offsets = [0, 0], sizes = [2, 32], strides = [1, 1]} : vector<2x128xf32> to vector<2x32xf32>
    %317 = vector.extract_strided_slice %315 {offsets = [0, 32], sizes = [2, 32], strides = [1, 1]} : vector<2x128xf32> to vector<2x32xf32>
    %318 = vector.extract_strided_slice %315 {offsets = [0, 64], sizes = [2, 32], strides = [1, 1]} : vector<2x128xf32> to vector<2x32xf32>
    %319 = vector.extract_strided_slice %315 {offsets = [0, 96], sizes = [2, 32], strides = [1, 1]} : vector<2x128xf32> to vector<2x32xf32>
    %320 = arith.mulf %317, %283 : vector<2x32xf32>
    %321 = arith.mulf %316, %318 : vector<2x32xf32>
    %322 = arith.addf %320, %321 : vector<2x32xf32>
    %323 = math.tanh %322 : vector<2x32xf32>
    %324 = arith.mulf %319, %323 : vector<2x32xf32>
    %325 = vector.extract_strided_slice %35 {offsets = [14, 0], sizes = [2, 128], strides = [1, 1]} : vector<16x128xf32> to vector<2x128xf32>
    %cst_33 = arith.constant dense<0.000000e+00> : vector<2x128xf32>
    %326 = tpu.matmul %304, %29, %cst_33 {dimension_numbers = #tpu.dot_dimension_numbers<[1], [0], [0], [1], [0, 0, 1, 1], [], []>} : vector<2x32xf32>, vector<32x128xf32>, vector<2x128xf32> -> vector<2x128xf32>
    %327 = arith.addf %325, %326 : vector<2x128xf32>
    %328 = vector.broadcast %44 : vector<1x128xf32> to vector<2x128xf32>
    %329 = arith.mulf %327, %328 : vector<2x128xf32>
    %330 = math.tanh %329 : vector<2x128xf32>
    %331 = vector.broadcast %44 : vector<1x128xf32> to vector<2x128xf32>
    %332 = arith.mulf %330, %331 : vector<2x128xf32>
    %333 = vector.broadcast %47 : vector<1x128xf32> to vector<2x128xf32>
    %334 = arith.addf %332, %333 : vector<2x128xf32>
    %335 = vector.extract_strided_slice %334 {offsets = [0, 0], sizes = [2, 32], strides = [1, 1]} : vector<2x128xf32> to vector<2x32xf32>
    %336 = vector.extract_strided_slice %334 {offsets = [0, 32], sizes = [2, 32], strides = [1, 1]} : vector<2x128xf32> to vector<2x32xf32>
    %337 = vector.extract_strided_slice %334 {offsets = [0, 64], sizes = [2, 32], strides = [1, 1]} : vector<2x128xf32> to vector<2x32xf32>
    %338 = vector.extract_strided_slice %334 {offsets = [0, 96], sizes = [2, 32], strides = [1, 1]} : vector<2x128xf32> to vector<2x32xf32>
    %339 = arith.mulf %336, %302 : vector<2x32xf32>
    %340 = arith.mulf %335, %337 : vector<2x32xf32>
    %341 = arith.addf %339, %340 : vector<2x32xf32>
    %342 = math.tanh %341 : vector<2x32xf32>
    %343 = arith.mulf %338, %342 : vector<2x32xf32>
    %344 = tpu.concatenate %343, %324 in 1 : vector<2x32xf32>, vector<2x32xf32> -> vector<2x64xf32>
    %cst_34 = arith.constant dense<0.000000e+00> : vector<2x128xf32>
    %345 = tpu.matmul %344, %31, %cst_34 {dimension_numbers = #tpu.dot_dimension_numbers<[1], [0], [0], [1], [0, 0, 1, 1], [], []>} : vector<2x64xf32>, vector<64x128xf32>, vector<2x128xf32> -> vector<2x128xf32>
    %346 = vector.broadcast %32 : vector<1x128xf32> to vector<2x128xf32>
    %347 = arith.addf %345, %346 : vector<2x128xf32>
    %348 = vector.broadcast %44 : vector<1x128xf32> to vector<2x128xf32>
    %349 = arith.mulf %347, %348 : vector<2x128xf32>
    %350 = math.tanh %349 : vector<2x128xf32>
    %351 = vector.broadcast %44 : vector<1x128xf32> to vector<2x128xf32>
    %352 = arith.mulf %350, %351 : vector<2x128xf32>
    %353 = vector.broadcast %47 : vector<1x128xf32> to vector<2x128xf32>
    %354 = arith.addf %352, %353 : vector<2x128xf32>
    %355 = vector.extract_strided_slice %354 {offsets = [0, 0], sizes = [2, 32], strides = [1, 1]} : vector<2x128xf32> to vector<2x32xf32>
    %356 = vector.extract_strided_slice %354 {offsets = [0, 32], sizes = [2, 32], strides = [1, 1]} : vector<2x128xf32> to vector<2x32xf32>
    %357 = vector.extract_strided_slice %354 {offsets = [0, 64], sizes = [2, 32], strides = [1, 1]} : vector<2x128xf32> to vector<2x32xf32>
    %358 = vector.extract_strided_slice %354 {offsets = [0, 96], sizes = [2, 32], strides = [1, 1]} : vector<2x128xf32> to vector<2x32xf32>
    %359 = arith.mulf %356, %322 : vector<2x32xf32>
    %360 = arith.mulf %355, %357 : vector<2x32xf32>
    %361 = arith.addf %359, %360 : vector<2x32xf32>
    %362 = math.tanh %361 : vector<2x32xf32>
    %363 = arith.mulf %358, %362 : vector<2x32xf32>
    %c128 = arith.constant 128 : index
    %c0_35 = arith.constant 0 : index
    %364 = vector.load %arg2[%c128, %c0_35] : memref<168x128xf32, #tpu.memory_space<vmem>>, vector<32x128xf32>
    %c160 = arith.constant 160 : index
    %c0_36 = arith.constant 0 : index
    %365 = vector.load %arg2[%c160, %c0_36] : memref<168x128xf32, #tpu.memory_space<vmem>>, vector<1x128xf32>
    %cst_37 = arith.constant dense<0.000000e+00> : vector<2x128xf32>
    %366 = tpu.matmul %363, %364, %cst_37 {dimension_numbers = #tpu.dot_dimension_numbers<[1], [0], [0], [1], [0, 0, 1, 1], [], []>} : vector<2x32xf32>, vector<32x128xf32>, vector<2x128xf32> -> vector<2x128xf32>
    %367 = vector.broadcast %365 : vector<1x128xf32> to vector<2x128xf32>
    %368 = arith.addf %366, %367 : vector<2x128xf32>
    %c0_38 = arith.constant 0 : index
    %c0_39 = arith.constant 0 : index
    %369 = vector.load %arg3[%c0_38, %c0_39] : memref<2x128xf32, #tpu.memory_space<vmem>>, vector<2x128xf32>
    tpu.vector_store %arg3[%c0_38, %c0_39], %368 {strides = array<i32>} : memref<2x128xf32, #tpu.memory_space<vmem>>, vector<2x128xf32>,
    return
  }
}

</mosaic_0001>

<bundles_post_ra>
// kernel: lstm_char_lm_forward.1
= control target key start
LH: loop header
LB: loop body
LE: loop exit
PB: predicated region body
PF: predicated region fallthrough
CT: control target
= control target key end

     0   :  { %v2756_v7 = vmov 0.0   ;;  %s3318_s0 = inlined_call_operand.vmem [shape: f32[16,96], index: 0, kind: input, shape index: {}]   ;;  %s3319_s1 = inlined_call_operand.vmem [shape: f32[104,176], index: 1, kind: input, shape index: {}]   ;;  %s3320_s2 = inlined_call_operand.vmem [shape: f32[168,128], index: 2, kind: input, shape index: {}]   ;;  %s3321_s3 = inlined_call_operand.hbm [shape: f32[2,128], index: 3, kind: output, shape index: {}]  }
   0x1   :  { %v18_v0 = vld [vmem:[%s3319_s1 + $0x8] sm:$0xff]  ;;  %v20_v1 = vld [vmem:[%s3319_s1 + $0x18] sm:$0xff]  ;;  %v17_v2 = vld [vmem:[%s3319_s1] sm:$0xff]  ;;  %125 = vmatprep.mubr.f32.mxu0 %v2756_v7 }
   0x2   :  { %v2474_v3 = vpack.c.bf16 %v20_v1, %v18_v0  ;;  %v19_v4 = vld [vmem:[%s3319_s1 + $0x10] sm:$0xff]  ;;  %v22_v5 = vld [vmem:[%s3319_s1 + $0x28] sm:$0xff]  ;;  %v24_v6 = vld [vmem:[%s3319_s1 + $0x38] sm:$0xff] }
   0x3   :  { %v2476_v8 = vpack.c.bf16 %v19_v4, %v17_v2  ;;  %v2478_v9 = vpack.c.bf16 %v24_v6, %v22_v5  ;;  %v21_v10 = vld [vmem:[%s3319_s1 + $0x20] sm:$0xff]  ;;  %v23_v11 = vld [vmem:[%s3319_s1 + $0x30] sm:$0xff]  ;;  %v26_v12 = vld [vmem:[%s3319_s1 + $0x48] sm:$0xff] }
   0x4   :  { %2475 = vmatprep.subr.bf16.mxu0 %v2474_v3  ;;  %v28_v13 = vld [vmem:[%s3319_s1 + $0x58] sm:$0xff]  ;;  %v2480_v14 = vpack.c.bf16 %v23_v11, %v21_v10  ;;  %v25_v16 = vld [vmem:[%s3319_s1 + $0x40] sm:$0xff]  ;;  %v27_v17 = vld [vmem:[%s3319_s1 + $0x50] sm:$0xff] }
   0x5   :  { %2477 = vmatpush1.bf16.msra.mxu0 %v2476_v8  ;;  %v2482_v15 = vpack.c.bf16 %v28_v13, %v26_v12  ;;  %v30_v18 = vld [vmem:[%s3319_s1 + $0x68] sm:$0xff]  ;;  %v32_v19 = vld [vmem:[%s3319_s1 + $0x78] sm:$0xff]  ;;  %v2484_v20 = vpack.c.bf16 %v27_v17, %v25_v16  ;;  %v29_v22 = vld [vmem:[%s3319_s1 + $0x60] sm:$0xff] }
   0x6   :  { %2479 = vmatprep.subr.bf16.mxu0 %v2478_v9  ;;  %v2486_v21 = vpack.c.bf16 %v32_v19, %v30_v18  ;;  %v31_v23 = vld [vmem:[%s3319_s1 + $0x70] sm:$0xff] }
   0x9   :  { %2481 = vmatpush1.bf16.msra.mxu0 %v2480_v14 }
   0xa   :  { %2483 = vmatprep.subr.bf16.mxu0 %v2482_v15 }
   0xb   :  { %8 = vsyncpa [#allocation3], 0  ;;  %v34_v24 = vld [vmem:[%s3319_s1 + $0x88] sm:$0xff]  ;;  %v36_v25 = vld [vmem:[%s3319_s1 + $0x98] sm:$0xff]  ;;  %v2488_v26 = vpack.c.bf16 %v31_v23, %v29_v22  ;;  %vm54_vm0 = vcmask 785408   ;;  %v44_v39 = vlaneseq  ;;  %s2757_s12 = smov 96  }
   0xc   :  { %v2490_v27 = vpack.c.bf16 %v36_v25, %v34_v24  ;;  %v33_v28 = vld [vmem:[%s3319_s1 + $0x80] sm:$0xff]  ;;  %v35_v29 = vld [vmem:[%s3319_s1 + $0x90] sm:$0xff]  ;;  %v38_v30 = vld [vmem:[%s3319_s1 + $0xa8] sm:$0xff]  ;;  %s2758_s13 = smov 112   ;;  %s2761_s14 = smov 48   ;;  %v2764_v60 = vmov 0.0|0.0  }
   0xd   :  { %2485 = vmatpush1.bf16.msra.mxu0 %v2484_v20  ;;  %v40_v31 = vld [vmem:[%s3319_s1 + $0xb8] sm:$0xff]  ;;  %v2492_v32 = vpack.c.bf16 %v35_v29, %v33_v28  ;;  %v37_v34 = vld [vmem:[%s3319_s1 + $0xa0] sm:$0xff]  ;;  %v39_v35 = vld [vmem:[%s3319_s1 + $0xb0] sm:$0xff]  ;;  %v45_v40 = vshrl.u32 %v44_v39, 7  ;;  %s2762_s15 = smov 32   ;;  %s2763_s20 = smov 16  }
   0xe   :  { %2487 = vmatprep.subr.bf16.mxu0 %v2486_v21  ;;  %v2494_v33 = vpack.c.bf16 %v40_v31, %v38_v30  ;;  %v2496_v36 = vpack.c.bf16 %v39_v35, %v37_v34  ;;  %v15_v37 = vld [vmem:[%s3318_s0] sm:$0xff]  ;;  %v16_v38 = vld [vmem:[%s3318_s0 + $0x8] sm:$0xff]  ;;  %s2759_s0 = smov 80   ;;  %v220_v57 = vld [vmem:[%s3320_s2 + $0x10] sm:$0xff]  ;;  %vm2765_vm1 = vmmov 0   ;;  %vm238_vm2 = vcmask 130048  }
   0xf   :  { %v46_v41 = vsub.s32 0, %v45_v40  ;;  %v2071_v42 = vld [vmem:[%s3319_s1 + $0xc0] ss:$8 sm:$0x3]  ;;  %s2760_s1 = smov 64   ;;  %v50_v50 = vsub.s32 1, %v45_v40 }
  0x10   :  { %v218_v52 = vld [vmem:[%s3320_s2] sm:$0xff]  ;;  %v219_v53 = vld [vmem:[%s3320_s2 + $0x8] sm:$0xff]  ;;  %v221_v58 = vld [vmem:[%s3320_s2 + $0x18] sm:$0xff]  ;;  %vm327_vm6 = vcmask 261120   ;;  %vm432_vm7 = vcmask 523264   ;;  %s2767_s5 = smov [#allocation2]  }
  0x11   :  { %2489 = vmatpush1.bf16.msra.mxu0 %v2488_v26  ;;  %v47_v43 = vrot.slane %v2071_v42, %v46_v41  ;;  %v51_v51 = vrot.slane %v2071_v42, %v50_v50  ;;  %v2498_v54 = vpack.c.bf16 %v219_v53, %v218_v52  ;;  %v2905_v59 = vpack.c.bf16 %v221_v58, %v220_v57  ;;  %v222_v61 = vld [vmem:[%s3320_s2 + $0x20] sm:$0xff]  ;;  %v223_v62 = vld [vmem:[%s3320_s2 + $0x28] sm:$0xff]  ;;  %s2063_s6 = sshll.u32 %s2767_s5, 4  ;;  %s2064_s6 = int_to_ptr.vmem [resolvable:$true] %s2063_s6 }
  0x12   :  { %2491 = vmatprep.subr.bf16.mxu0 %v2490_v27  ;;  %v2917_v63 = vpack.c.bf16 %v223_v62, %v222_v61  ;;  %v321_v42 = vand.u32 127, %v44_v39  ;;  %s2732_s7 = scalar_lea.vmem %s2064_s6, 32  ;;  %p2737_p1 = scmp.lt.s32.totalorder %s2064_s6, %s2064_s6 }
  0x13   :  { %2499 = vmatprep.subr.bf16.mxu1 %v2498_v54  ;;  %p2733_p0 = scmp.ne.s32.totalorder %s2064_s6, %s2732_s7  ;;  %p2738_p2 = scmp.lt.s32.totalorder %s2732_s7, %s2732_s7 }
  0x14   :  { %2501 = vmatpush3.bf16.msra.mxu1 %v2498_v54  ;;  %vm322_vm3 = vcmp.ge.s32.totalorder %v321_v42, 64  ;;  %vm323_vm4 = vcmp.lt.s32.totalorder %v321_v42, 96 }
  0x15   :  { %2493 = vmatpush1.bf16.msra.mxu0 %v2492_v32  ;;  %2502 = vmatprep.subr.bf16.mxu1 %v2764_v60  ;;  %vm324_vm5 = vmand %vm322_vm3, %vm323_vm4  ;;  %p2739_p3 = por %p2738_p2, %p2737_p1 }
  0x16   :  { %2495 = vmatprep.subr.bf16.mxu0 %v2494_v33 }
  0x17   :  { %p2740_p4 = pnand %p2739_p3, %p2733_p0 }
  0x19   :  { %2497 = vmatpush1.bf16.msra.mxu0 %v2496_v36 }
  0x1a   :  { %2520 = vmatprep.subr.bf16.mxu0 %v2764_v60 }
  0x1c   :  { %2072 = vmatmul.mubr.msk.f32.vlgmr.msra.gmra.mrb[0].mxu0 %vm54_vm0, %v15_v37 }
  0x1d   :  { %131 = vmatprep.mubr.f32.mxu0 %v2756_v7  ;;  %2522 = vmatpush3.bf16.msra.mxu0 %v2905_v59 }
  0x1e   :  { %2523 = vmatprep.subr.bf16.mxu0 %v2764_v60 }
  0x20   :  { %2073 = vmatmul.mubr.msk.f32.gmra.mrb[2].mxu0 %vm54_vm0, %v16_v38 }
  0x21   :  { %2525 = vmatpush3.bf16.msra.mxu0 %v2917_v63  ;;  %2261 = vmatprep.mubr.msk.f32.mxu0 %vm2765_vm1, %v2756_v7 }
  0x22   :  { %2538 = vmatprep.subr.bf16.mxu0 %v2764_v60 }
  0xef   :  { %v127_v44 = vpop.f32.mrb[0].mxu0 }
  0xf0   :  { %v2872_v45 = vadd.f32 %v127_v44, %v47_v43  ;;  %v129_v46 = vpop.f32.mrb[1].mxu0 }
  0xf1   :  { %v130_v55 = vadd.f32 %v129_v46, %v51_v51 }
  0xf2   :  { %148 = vrot.lane.b32.xlu1 %v2872_v45, %s2757_s12  ;;  %140 = vrot.lane.b32.xlu0 %v2872_v45, %s2758_s13 }
  0xf3   :  { %v133_v47 = vpop.f32.mrb[2].mxu0 }
  0xf4   :  { %v134_v48 = vadd.f32 %v133_v47, %v47_v43  ;;  %v135_v49 = vpop.f32.mrb[3].mxu0  ;;  %v2074_v43 = vld [vmem:[%s3320_s2 + $0x70] ss:$0 sm:$0xff] }
  0xf5   :  { %v136_v56 = vadd.f32 %v135_v49, %v51_v51 }
  0xf6   :  { %150 = vrot.lane.b32.xlu1 %v134_v48, %s2757_s12  ;;  %156 = vrot.lane.b32.xlu0 %v2872_v45, %s2759_s0 }
  0xfa   :  { %158 = vrot.lane.b32.xlu1 %v134_v48, %s2759_s0  ;;  %164 = vrot.lane.b32.xlu0 %v2872_v45, %s2760_s1 }
  0xfe   :  { %166 = vrot.lane.b32.xlu1 %v134_v48, %s2760_s1  ;;  %142 = vrot.lane.b32.xlu0 %v134_v48, %s2758_s13 }
 0x102   :  { %174 = vrot.lane.b32.xlu1 %v134_v48, %s2761_s14  ;;  %172 = vrot.lane.b32.xlu0 %v2872_v45, %s2761_s14 }
 0x106   :  { %182 = vrot.lane.b32.xlu1 %v134_v48, %s2762_s15  ;;  %180 = vrot.lane.b32.xlu0 %v2872_v45, %s2762_s15 }
 0x10a   :  { %190 = vrot.lane.b32.xlu1 %v134_v48, %s2763_s20  ;;  %188 = vrot.lane.b32.xlu0 %v2872_v45, %s2763_s20 }
 0x10e   :  { %202 = vrot.lane.b32.xlu1 %v136_v56, %s2758_s13  ;;  %200 = vrot.lane.b32.xlu0 %v130_v55, %s2758_s13 }
 0x112   :  { %210 = vrot.lane.b32.xlu1 %v136_v56, %s2757_s12  ;;  %208 = vrot.lane.b32.xlu0 %v130_v55, %s2757_s12 }
 0x164   :  { %v149_v0 = vpop.permute.xlu1 %148  ;;  %v141_v1 = vpop.permute.xlu0 %140 }
 0x165   :  { %v146_v6 = vmax.f32 %v2872_v45, %v141_v1  ;;  %v225_v1 = vld [vmem:[%s3320_s2 + $0x30] sm:$0xff] }
 0x167   :  { %v154_v10 = vmax.f32 %v146_v6, %v149_v0 }
 0x168   :  { %v151_v2 = vpop.permute.xlu1 %150  ;;  %v157_v3 = vpop.permute.xlu0 %156 }
 0x169   :  { %v162_v15 = vmax.f32 %v154_v10, %v157_v3  ;;  %v227_v3 = vld [vmem:[%s3320_s2 + $0x40] sm:$0xff] }
 0x16c   :  { %v159_v4 = vpop.permute.xlu1 %158  ;;  %v165_v5 = vpop.permute.xlu0 %164 }
 0x16d   :  { %v170_v17 = vmax.f32 %v162_v15, %v165_v5  ;;  %v228_v5 = vld [vmem:[%s3320_s2 + $0x48] sm:$0xff] }
 0x16e   :  { %v2969_v6 = vpack.c.bf16 %v228_v5, %v227_v3 }
 0x170   :  { %v167_v8 = vpop.permute.xlu1 %166  ;;  %v143_v9 = vpop.permute.xlu0 %142 }
 0x171   :  { %v147_v11 = vmax.f32 %v134_v48, %v143_v9  ;;  %v2766_v48 = vmov 0.5   ;;  %v230_v9 = vld [vmem:[%s3320_s2 + $0x58] sm:$0xff] }
 0x172   :  { %v2941_v49 = vsel %vm324_vm5, 1.0, %v2766_v48  ;;  %v2945_v54 = vsel %vm324_vm5, 0.0, %v2766_v48 }
 0x173   :  { %v155_v12 = vmax.f32 %v147_v11, %v151_v2  ;;  %v226_v2 = vld [vmem:[%s3320_s2 + $0x38] sm:$0xff]  ;;  %v231_v11 = vld [vmem:[%s3320_s2 + $0x60] sm:$0xff] }
 0x174   :  { %v175_v13 = vpop.permute.xlu1 %174  ;;  %v173_v14 = vpop.permute.xlu0 %172 }
 0x175   :  { %v163_v16 = vmax.f32 %v155_v12, %v159_v4  ;;  %v178_v22 = vmax.f32 %v170_v17, %v173_v14  ;;  %v2963_v4 = vpack.c.bf16 %v226_v2, %v225_v1  ;;  %v232_v12 = vld [vmem:[%s3320_s2 + $0x68] sm:$0xff] }
 0x176   :  { %v2990_v14 = vpack.c.bf16 %v232_v12, %v231_v11 }
 0x177   :  { %v171_v18 = vmax.f32 %v163_v16, %v167_v8  ;;  %v229_v8 = vld [vmem:[%s3320_s2 + $0x50] sm:$0xff] }
 0x178   :  { %v183_v19 = vpop.permute.xlu1 %182  ;;  %v181_v20 = vpop.permute.xlu0 %180  ;;  %v2979_v10 = vpack.c.bf16 %v230_v9, %v229_v8 }
 0x179   :  { %v179_v21 = vmax.f32 %v171_v18, %v175_v13  ;;  %v186_v24 = vmax.f32 %v178_v22, %v181_v20 }
 0x17b   :  { %v187_v23 = vmax.f32 %v179_v21, %v183_v19  ;;  %v3018_v19 = vld [vmem:[%s3320_s2 + $0x78] ss:$0 sm:$0xff] }
 0x17c   :  { %v191_v25 = vpop.permute.xlu1 %190  ;;  %v189_v26 = vpop.permute.xlu0 %188 }
 0x17d   :  { %v195_v27 = vmax.f32 %v187_v23, %v191_v25  ;;  %v194_v28 = vmax.f32 %v186_v24, %v189_v26 }
 0x17f   :  { %v197_v29 = vmax.f32 %v195_v27, %v136_v56  ;;  %v196_v30 = vmax.f32 %v194_v28, %v130_v55 }
 0x180   :  { %v203_v31 = vpop.permute.xlu1 %202  ;;  %v201_v32 = vpop.permute.xlu0 %200 }
 0x181   :  { %v207_v33 = vmax.f32 %v197_v29, %v203_v31  ;;  %v206_v34 = vmax.f32 %v196_v30, %v201_v32 }
 0x184   :  { %v211_v35 = vpop.permute.xlu1 %210  ;;  %v209_v36 = vpop.permute.xlu0 %208 }
 0x185   :  { %v215_v37 = vmax.f32 %v207_v33, %v211_v35  ;;  %v214_v38 = vmax.f32 %v206_v34, %v209_v36 }
 0x187   :  { %2664 = vtanh.f32 %v215_v37 }
 0x188   :  { %2666 = vtanh.f32 %v214_v38 }
 0x191   :  { %v2665_v40 = vpop.eup %2664 }
 0x192   :  { %v2667_v41 = vpop.eup %2666 }
 0x193   :  { %2220 = vmatprep.mubr.msk.f32.mxu1 %vm238_vm2, %v2667_v41 }
 0x194   :  { %2221 = vmatmul.mubr.msk.f32.vlgmr.msra.gmra.mrb[0].mxu1 %vm238_vm2, %v2665_v40 }
 0x195   :  { %2504 = vmatpush3.bf16.msra.mxu1 %v2905_v59  ;;  %2231 = vmatprep.mubr.msk.f32.mxu1 %vm2765_vm1, %v2756_v7 }
 0x196   :  { %2505 = vmatprep.subr.bf16.mxu1 %v2764_v60 }
 0x199   :  { %2507 = vmatpush3.bf16.msra.mxu1 %v2917_v63 }
 0x19a   :  { %2508 = vmatprep.subr.bf16.mxu1 %v2764_v60 }
 0x19c   :  { %2232 = vmatmul.mubr.f32.vlgmr.msra.gmra.mrb[2].mxu1 %v2756_v7 }
 0x19d   :  { %2250 = vmatprep.mubr.msk.f32.mxu1 %vm2765_vm1, %v2756_v7  ;;  %2510 = vmatpush3.bf16.msra.mxu1 %v2963_v4 }
 0x19e   :  { %2511 = vmatprep.subr.bf16.mxu1 %v2764_v60 }
 0x1a1   :  { %2513 = vmatpush3.bf16.msra.mxu1 %v2969_v6 }
 0x1a2   :  { %2514 = vmatprep.subr.bf16.mxu1 %v2764_v60 }
 0x1a5   :  { %2516 = vmatpush3.bf16.msra.mxu1 %v2979_v10 }
 0x1a6   :  { %2517 = vmatprep.subr.bf16.mxu1 %v2764_v60 }
 0x1a9   :  { %2519 = vmatpush3.bf16.msra.mxu1 %v2990_v14 }
 0x1aa   :  { %2526 = vmatprep.subr.bf16.mxu1 %v2764_v60 }
 0x267   :  { %v2222_v44 = vpop.f32.mrb[0].mxu1 }
 0x268   :  { %v2937_v45 = vadd.f32 %v2222_v44, %v2074_v43  ;;  %v311_v46 = vpop.f32.mrb[1].mxu1 }
 0x269   :  { %v2939_v47 = vadd.f32 %v2074_v43, %v311_v46 }
 0x26f   :  { %v397_v50 = vpop.f32.mrb[2].mxu1 }
 0x270   :  { %v401_v51 = vadd.f32 %v397_v50, %v2939_v47  ;;  %v2233_v39 = vpop.f32.mrb[3].mxu1 }
 0x272   :  { %v402_v52 = vmul.f32 %v401_v51, %v2941_v49 }
 0x274   :  { %2668 = vtanh.f32 %v402_v52 }
 0x27e   :  { %v2669_v53 = vpop.eup %2668 }
 0x27f   :  { %v404_v55 = vmul.f32 %v2669_v53, %v2941_v49 }
 0x281   :  { %v405_v56 = vadd.f32 %v404_v55, %v2945_v54 }
 0x283   :  { %408 = vrot.lane.b32.xlu0 %v405_v56, %s2760_s1  ;;  %v406_v61 = vmul.f32 0.0, %v405_v56 }
 0x2f5   :  { %v409_v57 = vpop.permute.xlu0 %408 }
 0x2f6   :  { %v411_v58 = vmul.f32 %v409_v57, %v405_v56 }
 0x2f8   :  { %413 = vrot.lane.b32.xlu1 %v411_v58, %s2762_s15 }
 0x36a   :  { %v414_v62 = vpop.permute.xlu1 %413 }
 0x36b   :  { %v2951_v0 = vadd.f32 %v414_v62, %v406_v61 }
 0x36d   :  { %2670 = vtanh.f32 %v2951_v0  ;;  %v608_v40 = vrot.slane %v2951_v0, 6 }
 0x377   :  { %v2671_v13 = vpop.eup %2670 }
 0x378   :  { %419 = vrot.lane.b32.xlu0 %v2671_v13, %s2760_s1 }
 0x3ea   :  { %v420_v15 = vpop.permute.xlu0 %419 }
 0x3eb   :  { %v422_v16 = vmul.f32 %v420_v15, %v405_v56 }
 0x3ed   :  { %424 = vrot.lane.b32.xlu1 %v422_v16, %s2762_s15 }
 0x45f   :  { %v425_v17 = vpop.permute.xlu1 %424 }
 0x460   :  { %v427_v18 = vsel %vm327_vm6, %v425_v17, 0.0  ;;  %2262 = vmatmul.mubr.msk.f32.vlgmr.msra.gmra.mrb[4].mxu0 %vm327_vm6, %v425_v17 }
 0x461   :  { %2251 = vmatmul.mubr.msk.f32.vlgmr.msra.gmra.mrb[4].mxu1 %vm432_vm7, %v427_v18  ;;  %2540 = vmatpush3.bf16.msra.mxu0 %v2905_v59 }
 0x462   :  { %2528 = vmatpush3.bf16.msra.mxu1 %v2963_v4  ;;  %2541 = vmatprep.subr.bf16.mxu0 %v2764_v60 }
 0x463   :  { %2529 = vmatprep.subr.bf16.mxu1 %v2764_v60  ;;  %2280 = vmatprep.mubr.msk.f32.mxu1 %vm2765_vm1, %v2756_v7 }
 0x464   :  { %2291 = vmatprep.mubr.msk.f32.mxu0 %vm2765_vm1, %v2756_v7 }
 0x465   :  { %2543 = vmatpush3.bf16.msra.mxu0 %v2917_v63 }
 0x466   :  { %2531 = vmatpush3.bf16.msra.mxu1 %v2969_v6  ;;  %2544 = vmatprep.subr.bf16.mxu0 %v2764_v60 }
 0x467   :  { %2532 = vmatprep.subr.bf16.mxu1 %v2764_v60 }
 0x46a   :  { %2534 = vmatpush3.bf16.msra.mxu1 %v2979_v10 }
 0x46b   :  { %2535 = vmatprep.subr.bf16.mxu1 %v2764_v60 }
 0x46e   :  { %2537 = vmatpush3.bf16.msra.mxu1 %v2990_v14 }
 0x46f   :  { %2556 = vmatprep.subr.bf16.mxu1 %v2764_v60 }
 0x533   :  { %v595_v20 = vpop.f32.mrb[4].mxu0 }
 0x534   :  { %v600_v21 = vrot.slane %v595_v20, 6  ;;  %v502_v22 = vpop.f32.mrb[4].mxu1  ;;  %v2263_v23 = vpop.f32.mrb[5].mxu0 }
 0x535   :  { %v503_v24 = vadd.f32 %v3018_v19, %v502_v22  ;;  %v2252_v25 = vpop.f32.mrb[5].mxu1 }
 0x536   :  { %v602_v26 = vadd.f32 %v600_v21, %v2939_v47 }
 0x537   :  { %v506_v27 = vmul.f32 %v503_v24, %v2941_v49 }
 0x538   :  { %v603_v28 = vmul.f32 %v602_v26, %v2941_v49 }
 0x539   :  { %2672 = vtanh.f32 %v506_v27 }
 0x53a   :  { %2674 = vtanh.f32 %v603_v28 }
 0x543   :  { %v2673_v29 = vpop.eup %2672 }
 0x544   :  { %v2675_v30 = vpop.eup %2674  ;;  %v508_v31 = vmul.f32 %v2673_v29, %v2941_v49 }
 0x545   :  { %v605_v32 = vmul.f32 %v2675_v30, %v2941_v49 }
 0x546   :  { %v509_v33 = vadd.f32 %v508_v31, %v2945_v54 }
 0x547   :  { %v606_v34 = vadd.f32 %v605_v32, %v2945_v54 }
 0x548   :  { %512 = vrot.lane.b32.xlu0 %v509_v33, %s2760_s1  ;;  %v510_v41 = vmul.f32 0.0, %v509_v33 }
 0x549   :  { %612 = vrot.lane.b32.xlu1 %v606_v34, %s2760_s1  ;;  %v610_v43 = vmul.f32 %v608_v40, %v606_v34 }
 0x5ba   :  { %v513_v35 = vpop.permute.xlu0 %512 }
 0x5bb   :  { %v515_v36 = vmul.f32 %v513_v35, %v509_v33  ;;  %v613_v37 = vpop.permute.xlu1 %612 }
 0x5bc   :  { %v615_v38 = vmul.f32 %v613_v37, %v606_v34 }
 0x5bd   :  { %517 = vrot.lane.b32.xlu0 %v515_v36, %s2762_s15 }
 0x5be   :  { %617 = vrot.lane.b32.xlu1 %v615_v38, %s2762_s15 }
 0x62f   :  { %v518_v42 = vpop.permute.xlu0 %517 }
 0x630   :  { %v3033_v44 = vadd.f32 %v518_v42, %v510_v41  ;;  %v618_v46 = vpop.permute.xlu1 %617 }
 0x631   :  { %v3035_v48 = vadd.f32 %v618_v46, %v610_v43 }
 0x632   :  { %2676 = vtanh.f32 %v3033_v44 }
 0x633   :  { %2678 = vtanh.f32 %v3035_v48  ;;  %v816_v27 = vrot.slane %v3035_v48, 6 }
 0x63c   :  { %v2677_v50 = vpop.eup %2676 }
 0x63d   :  { %v2679_v51 = vpop.eup %2678  ;;  %523 = vrot.lane.b32.xlu0 %v2677_v50, %s2760_s1 }
 0x63e   :  { %623 = vrot.lane.b32.xlu1 %v2679_v51, %s2760_s1 }
 0x6af   :  { %v524_v39 = vpop.permute.xlu0 %523 }
 0x6b0   :  { %v526_v52 = vmul.f32 %v524_v39, %v509_v33  ;;  %v624_v53 = vpop.permute.xlu1 %623 }
 0x6b1   :  { %v626_v55 = vmul.f32 %v624_v53, %v606_v34 }
 0x6b2   :  { %v632_v56 = vrot.slane %v526_v52, 6 }
 0x6b3   :  { %628 = vrot.lane.b32.xlu0 %v626_v55, %s2762_s15  ;;  %v732_v57 = vrot.slane %v626_v55, 2 }
 0x6b4   :  { %633 = vrot.lane.b32.xlu1 %v632_v56, %s2760_s1 }
 0x6b7   :  { %733 = vrot.lane.b32.xlu0 %v732_v57, %s2762_s15 }
 0x725   :  { %v629_v58 = vpop.permute.xlu0 %628 }
 0x726   :  { %v634_v61 = vpop.permute.xlu1 %633 }
 0x727   :  { %v636_v62 = vsel %vm327_vm6, %v629_v58, %v634_v61 }
 0x728   :  { %v638_v0 = vrot.slane %v636_v62, 2 }
 0x729   :  { %v734_v1 = vpop.permute.xlu0 %733 }
 0x72a   :  { %2281 = vmatmul.mubr.msk.f32.vlgmr.msra.gmra.mrb[6].mxu1 %vm432_vm7, %v638_v0  ;;  %2292 = vmatmul.mubr.msk.f32.vlgmr.msra.gmra.mrb[6].mxu0 %vm327_vm6, %v734_v1 }
 0x72b   :  { %2546 = vmatpush3.bf16.msra.mxu0 %v2963_v4  ;;  %2558 = vmatpush3.bf16.msra.mxu1 %v2905_v59 }
 0x72c   :  { %2547 = vmatprep.subr.bf16.mxu0 %v2764_v60  ;;  %2559 = vmatprep.subr.bf16.mxu1 %v2764_v60 }
 0x72d   :  { %2310 = vmatprep.mubr.msk.f32.mxu0 %vm2765_vm1, %v2756_v7  ;;  %2321 = vmatprep.mubr.msk.f32.mxu1 %vm2765_vm1, %v2756_v7 }
 0x72f   :  { %2549 = vmatpush3.bf16.msra.mxu0 %v2969_v6  ;;  %2561 = vmatpush3.bf16.msra.mxu1 %v2917_v63 }
 0x730   :  { %2550 = vmatprep.subr.bf16.mxu0 %v2764_v60  ;;  %2562 = vmatprep.subr.bf16.mxu1 %v2764_v60 }
 0x733   :  { %2552 = vmatpush3.bf16.msra.mxu0 %v2979_v10 }
 0x734   :  { %2553 = vmatprep.subr.bf16.mxu0 %v2764_v60 }
 0x737   :  { %2555 = vmatpush3.bf16.msra.mxu0 %v2990_v14 }
 0x738   :  { %2574 = vmatprep.subr.bf16.mxu0 %v2764_v60 }
 0x7fd   :  { %v707_v2 = vpop.f32.mrb[6].mxu1  ;;  %v803_v3 = vpop.f32.mrb[6].mxu0 }
 0x7fe   :  { %v708_v5 = vadd.f32 %v3018_v19, %v707_v2  ;;  %v808_v8 = vrot.slane %v803_v3, 4  ;;  %v2282_v9 = vpop.f32.mrb[7].mxu1  ;;  %v2293_v11 = vpop.f32.mrb[7].mxu0 }
 0x800   :  { %v711_v12 = vmul.f32 %v708_v5, %v2941_v49  ;;  %v810_v13 = vadd.f32 %v808_v8, %v2939_v47 }
 0x802   :  { %2680 = vtanh.f32 %v711_v12  ;;  %v811_v15 = vmul.f32 %v810_v13, %v2941_v49 }
 0x804   :  { %2682 = vtanh.f32 %v811_v15 }
 0x80c   :  { %v2681_v16 = vpop.eup %2680 }
 0x80d   :  { %v713_v17 = vmul.f32 %v2681_v16, %v2941_v49 }
 0x80e   :  { %v2683_v18 = vpop.eup %2682 }
 0x80f   :  { %v714_v20 = vadd.f32 %v713_v17, %v2945_v54  ;;  %v813_v21 = vmul.f32 %v2683_v18, %v2941_v49 }
 0x811   :  { %717 = vrot.lane.b32.xlu1 %v714_v20, %s2760_s1  ;;  %v814_v22 = vadd.f32 %v813_v21, %v2945_v54  ;;  %v715_v28 = vmul.f32 %v714_v20, %v3033_v44 }
 0x813   :  { %820 = vrot.lane.b32.xlu0 %v814_v22, %s2760_s1  ;;  %v818_v31 = vmul.f32 %v816_v27, %v814_v22 }
 0x883   :  { %v718_v23 = vpop.permute.xlu1 %717 }
 0x884   :  { %v720_v24 = vmul.f32 %v718_v23, %v714_v20 }
 0x885   :  { %v821_v25 = vpop.permute.xlu0 %820 }
 0x886   :  { %v823_v26 = vmul.f32 %v821_v25, %v814_v22  ;;  %722 = vrot.lane.b32.xlu1 %v720_v24, %s2762_s15 }
 0x888   :  { %825 = vrot.lane.b32.xlu0 %v823_v26, %s2762_s15 }
 0x8f8   :  { %v723_v29 = vpop.permute.xlu1 %722 }
 0x8f9   :  { %v3077_v30 = vadd.f32 %v723_v29, %v715_v28 }
 0x8fa   :  { %v826_v32 = vpop.permute.xlu0 %825 }
 0x8fb   :  { %2684 = vtanh.f32 %v3077_v30  ;;  %v3080_v33 = vadd.f32 %v826_v32, %v818_v31 }
 0x8fd   :  { %2686 = vtanh.f32 %v3080_v33  ;;  %v1024_v13 = vrot.slane %v3080_v33, 6 }
 0x905   :  { %v2685_v34 = vpop.eup %2684 }
 0x906   :  { %728 = vrot.lane.b32.xlu1 %v2685_v34, %s2760_s1 }
 0x907   :  { %v2687_v35 = vpop.eup %2686 }
 0x908   :  { %831 = vrot.lane.b32.xlu0 %v2687_v35, %s2760_s1 }
 0x978   :  { %v729_v36 = vpop.permute.xlu1 %728 }
 0x979   :  { %v731_v37 = vmul.f32 %v729_v36, %v714_v20 }
 0x97a   :  { %v832_v38 = vpop.permute.xlu0 %831 }
 0x97b   :  { %v840_v40 = vrot.slane %v731_v37, 4  ;;  %v834_v41 = vmul.f32 %v832_v38, %v814_v22 }
 0x97d   :  { %836 = vrot.lane.b32.xlu1 %v834_v41, %s2762_s15  ;;  %841 = vrot.lane.b32.xlu0 %v840_v40, %s2760_s1  ;;  %v940_v42 = vrot.slane %v834_v41, 4 }
 0x981   :  { %941 = vrot.lane.b32.xlu1 %v940_v42, %s2762_s15 }
 0x9ef   :  { %v842_v43 = vpop.permute.xlu0 %841  ;;  %v837_v44 = vpop.permute.xlu1 %836 }
 0x9f0   :  { %v844_v46 = vsel %vm327_vm6, %v837_v44, %v842_v43 }
 0x9f1   :  { %v846_v48 = vrot.slane %v844_v46, 4 }
 0x9f3   :  { %2311 = vmatmul.mubr.msk.f32.vlgmr.msra.gmra.mrb[8].mxu0 %vm432_vm7, %v846_v48  ;;  %v942_v50 = vpop.permute.xlu1 %941 }
 0x9f4   :  { %2322 = vmatmul.mubr.msk.f32.vlgmr.msra.gmra.mrb[8].mxu1 %vm327_vm6, %v942_v50  ;;  %2576 = vmatpush3.bf16.msra.mxu0 %v2905_v59 }
 0x9f5   :  { %2564 = vmatpush3.bf16.msra.mxu1 %v2963_v4  ;;  %2577 = vmatprep.subr.bf16.mxu0 %v2764_v60 }
 0x9f6   :  { %2565 = vmatprep.subr.bf16.mxu1 %v2764_v60  ;;  %2340 = vmatprep.mubr.msk.f32.mxu1 %vm2765_vm1, %v2756_v7 }
 0x9f7   :  { %2351 = vmatprep.mubr.msk.f32.mxu0 %vm2765_vm1, %v2756_v7 }
 0x9f8   :  { %2579 = vmatpush3.bf16.msra.mxu0 %v2917_v63 }
 0x9f9   :  { %2567 = vmatpush3.bf16.msra.mxu1 %v2969_v6  ;;  %2580 = vmatprep.subr.bf16.mxu0 %v2764_v60 }
 0x9fa   :  { %2568 = vmatprep.subr.bf16.mxu1 %v2764_v60 }
 0x9fd   :  { %2570 = vmatpush3.bf16.msra.mxu1 %v2979_v10 }
 0x9fe   :  { %2571 = vmatprep.subr.bf16.mxu1 %v2764_v60 }
 0xa01   :  { %2573 = vmatpush3.bf16.msra.mxu1 %v2990_v14 }
 0xa02   :  { %2592 = vmatprep.subr.bf16.mxu1 %v2764_v60 }
 0xac6   :  { %v915_v51 = vpop.f32.mrb[8].mxu0 }
 0xac7   :  { %v916_v39 = vadd.f32 %v3018_v19, %v915_v51  ;;  %v2312_v52 = vpop.f32.mrb[9].mxu0  ;;  %v1011_v53 = vpop.f32.mrb[8].mxu1 }
 0xac8   :  { %v1016_v55 = vrot.slane %v1011_v53, 2  ;;  %v2323_v56 = vpop.f32.mrb[9].mxu1 }
 0xac9   :  { %v919_v57 = vmul.f32 %v916_v39, %v2941_v49 }
 0xaca   :  { %v1018_v58 = vadd.f32 %v1016_v55, %v2939_v47 }
 0xacb   :  { %2688 = vtanh.f32 %v919_v57 }
 0xacc   :  { %v1019_v61 = vmul.f32 %v1018_v58, %v2941_v49 }
 0xace   :  { %2690 = vtanh.f32 %v1019_v61 }
 0xad5   :  { %v2689_v62 = vpop.eup %2688 }
 0xad6   :  { %v921_v0 = vmul.f32 %v2689_v62, %v2941_v49 }
 0xad8   :  { %v2691_v1 = vpop.eup %2690  ;;  %v922_v2 = vadd.f32 %v921_v0, %v2945_v54 }
 0xad9   :  { %v1021_v3 = vmul.f32 %v2691_v1, %v2941_v49 }
 0xada   :  { %925 = vrot.lane.b32.xlu0 %v922_v2, %s2760_s1  ;;  %v923_v12 = vmul.f32 %v922_v2, %v3077_v30 }
 0xadb   :  { %v1022_v5 = vadd.f32 %v1021_v3, %v2945_v54 }
 0xadd   :  { %1028 = vrot.lane.b32.xlu1 %v1022_v5, %s2760_s1  ;;  %v1026_v17 = vmul.f32 %v1024_v13, %v1022_v5 }
 0xb4c   :  { %v926_v8 = vpop.permute.xlu0 %925 }
 0xb4d   :  { %v928_v47 = vmul.f32 %v926_v8, %v922_v2 }
 0xb4f   :  { %930 = vrot.lane.b32.xlu0 %v928_v47, %s2762_s15  ;;  %v1029_v9 = vpop.permute.xlu1 %1028 }
 0xb50   :  { %v1031_v11 = vmul.f32 %v1029_v9, %v1022_v5 }
 0xb52   :  { %1033 = vrot.lane.b32.xlu1 %v1031_v11, %s2762_s15 }
 0xbc1   :  { %v931_v15 = vpop.permute.xlu0 %930 }
 0xbc2   :  { %v3121_v16 = vadd.f32 %v931_v15, %v923_v12 }
 0xbc4   :  { %2692 = vtanh.f32 %v3121_v16  ;;  %v1034_v18 = vpop.permute.xlu1 %1033 }
 0xbc5   :  { %v3124_v20 = vadd.f32 %v1034_v18, %v1026_v17 }
 0xbc7   :  { %2694 = vtanh.f32 %v3124_v20  ;;  %v1229_v56 = vrot.slane %v3124_v20, 6 }
 0xbce   :  { %v2693_v21 = vpop.eup %2692 }
 0xbcf   :  { %936 = vrot.lane.b32.xlu0 %v2693_v21, %s2760_s1 }
 0xbd1   :  { %v2695_v22 = vpop.eup %2694 }
 0xbd2   :  { %1039 = vrot.lane.b32.xlu1 %v2695_v22, %s2760_s1 }
 0xc41   :  { %v937_v23 = vpop.permute.xlu0 %936 }
 0xc42   :  { %v939_v24 = vmul.f32 %v937_v23, %v922_v2 }
 0xc44   :  { %v1048_v25 = vrot.slane %v939_v24, 2  ;;  %v1040_v26 = vpop.permute.xlu1 %1039 }
 0xc45   :  { %v1042_v27 = vmul.f32 %v1040_v26, %v1022_v5 }
 0xc46   :  { %1049 = vrot.lane.b32.xlu1 %v1048_v25, %s2760_s1 }
 0xc47   :  { %1044 = vrot.lane.b32.xlu0 %v1042_v27, %s2762_s15  ;;  %v1148_v28 = vrot.slane %v1042_v27, 6 }
 0xc4b   :  { %1149 = vrot.lane.b32.xlu0 %v1148_v28, %s2762_s15 }
 0xcb8   :  { %v1050_v29 = vpop.permute.xlu1 %1049 }
 0xcb9   :  { %v1045_v30 = vpop.permute.xlu0 %1044 }
 0xcba   :  { %v1052_v31 = vsel %vm327_vm6, %v1045_v30, %v1050_v29 }
 0xcbb   :  { %v1054_v32 = vrot.slane %v1052_v31, 6 }
 0xcbd   :  { %v1150_v33 = vpop.permute.xlu0 %1149  ;;  %2341 = vmatmul.mubr.msk.f32.vlgmr.msra.gmra.mrb[10].mxu1 %vm432_vm7, %v1054_v32 }
 0xcbe   :  { %2352 = vmatmul.mubr.msk.f32.vlgmr.msra.gmra.mrb[10].mxu0 %vm327_vm6, %v1150_v33  ;;  %2594 = vmatpush3.bf16.msra.mxu1 %v2905_v59 }
 0xcbf   :  { %2582 = vmatpush3.bf16.msra.mxu0 %v2963_v4  ;;  %2595 = vmatprep.subr.bf16.mxu1 %v2764_v60 }
 0xcc0   :  { %2583 = vmatprep.subr.bf16.mxu0 %v2764_v60  ;;  %2381 = vmatprep.mubr.msk.f32.mxu1 %vm2765_vm1, %v2756_v7 }
 0xcc1   :  { %2370 = vmatprep.mubr.msk.f32.mxu0 %vm2765_vm1, %v2756_v7 }
 0xcc2   :  { %2597 = vmatpush3.bf16.msra.mxu1 %v2917_v63 }
 0xcc3   :  { %2585 = vmatpush3.bf16.msra.mxu0 %v2969_v6  ;;  %2598 = vmatprep.subr.bf16.mxu1 %v2764_v60 }
 0xcc4   :  { %2586 = vmatprep.subr.bf16.mxu0 %v2764_v60 }
 0xcc7   :  { %2588 = vmatpush3.bf16.msra.mxu0 %v2979_v10 }
 0xcc8   :  { %2589 = vmatprep.subr.bf16.mxu0 %v2764_v60 }
 0xccb   :  { %2591 = vmatpush3.bf16.msra.mxu0 %v2990_v14 }
 0xccc   :  { %2610 = vmatprep.subr.bf16.mxu0 %v2764_v60 }
 0xd90   :  { %v1123_v34 = vpop.f32.mrb[10].mxu1 }
 0xd91   :  { %v1124_v35 = vadd.f32 %v3018_v19, %v1123_v34  ;;  %v2342_v36 = vpop.f32.mrb[11].mxu1  ;;  %v1219_v37 = vpop.f32.mrb[10].mxu0 }
 0xd92   :  { %v1223_v38 = vadd.f32 %v1219_v37, %v2937_v45  ;;  %v2353_v40 = vpop.f32.mrb[11].mxu0 }
 0xd93   :  { %v1127_v41 = vmul.f32 %v1124_v35, %v2941_v49 }
 0xd94   :  { %v1224_v42 = vmul.f32 %v1223_v38, %v2941_v49 }
 0xd95   :  { %2696 = vtanh.f32 %v1127_v41 }
 0xd96   :  { %2698 = vtanh.f32 %v1224_v42 }
 0xd9f   :  { %v2697_v43 = vpop.eup %2696 }
 0xda0   :  { %v2699_v44 = vpop.eup %2698  ;;  %v1129_v46 = vmul.f32 %v2697_v43, %v2941_v49 }
 0xda1   :  { %v1226_v48 = vmul.f32 %v2699_v44, %v2941_v49 }
 0xda2   :  { %v1130_v50 = vadd.f32 %v1129_v46, %v2945_v54 }
 0xda3   :  { %v1227_v51 = vadd.f32 %v1226_v48, %v2945_v54 }
 0xda4   :  { %1133 = vrot.lane.b32.xlu1 %v1130_v50, %s2760_s1  ;;  %v1131_v57 = vmul.f32 %v1130_v50, %v3121_v16 }
 0xda5   :  { %1233 = vrot.lane.b32.xlu0 %v1227_v51, %s2760_s1  ;;  %v1231_v61 = vmul.f32 %v1229_v56, %v1227_v51 }
 0xe16   :  { %v1134_v39 = vpop.permute.xlu1 %1133 }
 0xe17   :  { %v1136_v52 = vmul.f32 %v1134_v39, %v1130_v50  ;;  %v1234_v53 = vpop.permute.xlu0 %1233 }
 0xe18   :  { %v1236_v55 = vmul.f32 %v1234_v53, %v1227_v51 }
 0xe19   :  { %1138 = vrot.lane.b32.xlu1 %v1136_v52, %s2762_s15 }
 0xe1a   :  { %1238 = vrot.lane.b32.xlu0 %v1236_v55, %s2762_s15 }
 0xe8b   :  { %v1139_v58 = vpop.permute.xlu1 %1138 }
 0xe8c   :  { %v1141_v62 = vadd.f32 %v1139_v58, %v1131_v57  ;;  %v1239_v0 = vpop.permute.xlu0 %1238 }
 0xe8d   :  { %v1241_v1 = vadd.f32 %v1239_v0, %v1231_v61 }
 0xe8e   :  { %2700 = vtanh.f32 %v1141_v62 }
 0xe8f   :  { %2702 = vtanh.f32 %v1241_v1  ;;  %v1432_v35 = vrot.slane %v1241_v1, 6 }
 0xe98   :  { %v2701_v2 = vpop.eup %2700 }
 0xe99   :  { %v2703_v3 = vpop.eup %2702  ;;  %1144 = vrot.lane.b32.xlu1 %v2701_v2, %s2760_s1 }
 0xe9a   :  { %1244 = vrot.lane.b32.xlu0 %v2703_v3, %s2760_s1 }
 0xf0b   :  { %v1145_v5 = vpop.permute.xlu1 %1144 }
 0xf0c   :  { %v1147_v8 = vmul.f32 %v1145_v5, %v1130_v50  ;;  %v1245_v47 = vpop.permute.xlu0 %1244 }
 0xf0d   :  { %v1247_v9 = vmul.f32 %v1245_v47, %v1227_v51 }
 0xf0e   :  { %1253 = vrot.lane.b32.xlu0 %v1147_v8, %s2760_s1 }
 0xf0f   :  { %1249 = vrot.lane.b32.xlu1 %v1247_v9, %s2762_s15 }
 0xf80   :  { %v1254_v11 = vpop.permute.xlu0 %1253 }
 0xf81   :  { %v1250_v12 = vpop.permute.xlu1 %1249 }
 0xf82   :  { %v1256_v13 = vsel %vm327_vm6, %v1250_v12, %v1254_v11  ;;  %2382 = vmatmul.mubr.msk.f32.vlgmr.msra.gmra.mrb[12].mxu1 %vm327_vm6, %v1250_v12 }
 0xf83   :  { %2371 = vmatmul.mubr.msk.f32.vlgmr.msra.gmra.mrb[12].mxu0 %vm432_vm7, %v1256_v13  ;;  %2600 = vmatpush3.bf16.msra.mxu1 %v2963_v4 }
 0xf84   :  { %2601 = vmatprep.subr.bf16.mxu1 %v2764_v60  ;;  %2612 = vmatpush3.bf16.msra.mxu0 %v2905_v59 }
 0xf85   :  { %2613 = vmatprep.subr.bf16.mxu0 %v2764_v60  ;;  %2400 = vmatprep.mubr.msk.f32.mxu1 %vm2765_vm1, %v2756_v7 }
 0xf86   :  { %2411 = vmatprep.mubr.msk.f32.mxu0 %vm2765_vm1, %v2756_v7 }
 0xf87   :  { %2603 = vmatpush3.bf16.msra.mxu1 %v2969_v6 }
 0xf88   :  { %2604 = vmatprep.subr.bf16.mxu1 %v2764_v60  ;;  %2615 = vmatpush3.bf16.msra.mxu0 %v2917_v63 }
 0xf89   :  { %2616 = vmatprep.subr.bf16.mxu0 %v2764_v60 }
 0xf8b   :  { %2606 = vmatpush3.bf16.msra.mxu1 %v2979_v10 }
 0xf8c   :  { %2607 = vmatprep.subr.bf16.mxu1 %v2764_v60 }
 0xf8f   :  { %2609 = vmatpush3.bf16.msra.mxu1 %v2990_v14 }
 0xf90   :  { %2628 = vmatprep.subr.bf16.mxu1 %v2764_v60 }
0x1055   :  { %v1419_v15 = vpop.f32.mrb[12].mxu1 }
0x1056   :  { %v1424_v16 = vrot.slane %v1419_v15, 6  ;;  %v1326_v17 = vpop.f32.mrb[12].mxu0  ;;  %v2383_v18 = vpop.f32.mrb[13].mxu1 }
0x1057   :  { %v1327_v20 = vadd.f32 %v3018_v19, %v1326_v17  ;;  %v2372_v21 = vpop.f32.mrb[13].mxu0 }
0x1058   :  { %v1426_v22 = vadd.f32 %v1424_v16, %v2937_v45 }
0x1059   :  { %v1330_v23 = vmul.f32 %v1327_v20, %v2941_v49 }
0x105a   :  { %v1427_v24 = vmul.f32 %v1426_v22, %v2941_v49 }
0x105b   :  { %2704 = vtanh.f32 %v1330_v23 }
0x105c   :  { %2706 = vtanh.f32 %v1427_v24 }
0x1065   :  { %v2705_v25 = vpop.eup %2704 }
0x1066   :  { %v2707_v26 = vpop.eup %2706  ;;  %v1332_v27 = vmul.f32 %v2705_v25, %v2941_v49 }
0x1067   :  { %v1429_v28 = vmul.f32 %v2707_v26, %v2941_v49 }
0x1068   :  { %v1333_v29 = vadd.f32 %v1332_v27, %v2945_v54 }
0x1069   :  { %v1430_v30 = vadd.f32 %v1429_v28, %v2945_v54 }
0x106a   :  { %1336 = vrot.lane.b32.xlu1 %v1333_v29, %s2760_s1  ;;  %v1334_v36 = vmul.f32 %v1333_v29, %v1141_v62 }
0x106b   :  { %1436 = vrot.lane.b32.xlu0 %v1430_v30, %s2760_s1  ;;  %v1434_v38 = vmul.f32 %v1432_v35, %v1430_v30 }
0x10dc   :  { %v1337_v31 = vpop.permute.xlu1 %1336 }
0x10dd   :  { %v1339_v32 = vmul.f32 %v1337_v31, %v1333_v29  ;;  %v1437_v33 = vpop.permute.xlu0 %1436 }
0x10de   :  { %v1439_v34 = vmul.f32 %v1437_v33, %v1430_v30 }
0x10df   :  { %1341 = vrot.lane.b32.xlu1 %v1339_v32, %s2762_s15 }
0x10e0   :  { %1441 = vrot.lane.b32.xlu0 %v1439_v34, %s2762_s15 }
0x1151   :  { %v1342_v37 = vpop.permute.xlu1 %1341 }
0x1152   :  { %v3200_v40 = vadd.f32 %v1342_v37, %v1334_v36  ;;  %v1442_v41 = vpop.permute.xlu0 %1441 }
0x1153   :  { %v3202_v42 = vadd.f32 %v1442_v41, %v1434_v38 }
0x1154   :  { %2708 = vtanh.f32 %v3200_v40 }
0x1155   :  { %2710 = vtanh.f32 %v3202_v42  ;;  %v1640_v20 = vrot.slane %v3202_v42, 6 }
0x115e   :  { %v2709_v43 = vpop.eup %2708 }
0x115f   :  { %v2711_v44 = vpop.eup %2710  ;;  %1347 = vrot.lane.b32.xlu1 %v2709_v43, %s2760_s1 }
0x1160   :  { %1447 = vrot.lane.b32.xlu0 %v2711_v44, %s2760_s1 }
0x11d1   :  { %v1348_v46 = vpop.permute.xlu1 %1347 }
0x11d2   :  { %v1350_v48 = vmul.f32 %v1348_v46, %v1333_v29  ;;  %v1448_v50 = vpop.permute.xlu0 %1447 }
0x11d3   :  { %v1450_v51 = vmul.f32 %v1448_v50, %v1430_v30 }
0x11d4   :  { %v1456_v39 = vrot.slane %v1350_v48, 6 }
0x11d5   :  { %1452 = vrot.lane.b32.xlu1 %v1450_v51, %s2762_s15  ;;  %v1556_v52 = vrot.slane %v1450_v51, 2 }
0x11d6   :  { %1457 = vrot.lane.b32.xlu0 %v1456_v39, %s2760_s1 }
0x11d9   :  { %1557 = vrot.lane.b32.xlu1 %v1556_v52, %s2762_s15 }
0x1247   :  { %v1453_v53 = vpop.permute.xlu1 %1452 }
0x1248   :  { %v1458_v55 = vpop.permute.xlu0 %1457 }
0x1249   :  { %v1460_v56 = vsel %vm327_vm6, %v1453_v53, %v1458_v55 }
0x124a   :  { %v1462_v57 = vrot.slane %v1460_v56, 2 }
0x124b   :  { %v1558_v58 = vpop.permute.xlu1 %1557 }
0x124c   :  { %2401 = vmatmul.mubr.msk.f32.vlgmr.msra.gmra.mrb[14].mxu1 %vm432_vm7, %v1462_v57  ;;  %2412 = vmatmul.mubr.msk.f32.vlgmr.msra.gmra.mrb[14].mxu0 %vm327_vm6, %v1558_v58 }
0x124d   :  { %2618 = vmatpush3.bf16.msra.mxu0 %v2963_v4  ;;  %2630 = vmatpush3.bf16.msra.mxu1 %v2905_v59 }
0x124e   :  { %2619 = vmatprep.subr.bf16.mxu0 %v2764_v60  ;;  %2631 = vmatprep.subr.bf16.mxu1 %v2764_v60 }
0x124f   :  { %2430 = vmatprep.mubr.msk.f32.mxu0 %vm2765_vm1, %v2756_v7  ;;  %2441 = vmatprep.mubr.msk.f32.mxu1 %vm2765_vm1, %v2756_v7 }
0x1251   :  { %2621 = vmatpush3.bf16.msra.mxu0 %v2969_v6  ;;  %2633 = vmatpush3.bf16.msra.mxu1 %v2917_v63 }
0x1252   :  { %2622 = vmatprep.subr.bf16.mxu0 %v2764_v60  ;;  %2634 = vmatprep.subr.bf16.mxu1 %v2764_v60 }
0x1255   :  { %2624 = vmatpush3.bf16.msra.mxu0 %v2979_v10 }
0x1256   :  { %2625 = vmatprep.subr.bf16.mxu0 %v2764_v60 }
0x1259   :  { %2627 = vmatpush3.bf16.msra.mxu0 %v2990_v14 }
0x125a   :  { %2646 = vmatprep.subr.bf16.mxu0 %v2764_v60 }
0x131f   :  { %v1531_v59 = vpop.f32.mrb[14].mxu1  ;;  %v1627_v61 = vpop.f32.mrb[14].mxu0 }
0x1320   :  { %v1532_v62 = vadd.f32 %v3018_v19, %v1531_v59  ;;  %v1632_v0 = vrot.slane %v1627_v61, 4  ;;  %v2402_v1 = vpop.f32.mrb[15].mxu1  ;;  %v2413_v2 = vpop.f32.mrb[15].mxu0 }
0x1322   :  { %v1535_v63 = vmul.f32 %v1532_v62, %v2941_v49  ;;  %v1634_v3 = vadd.f32 %v1632_v0, %v2937_v45 }
0x1324   :  { %2712 = vtanh.f32 %v1535_v63  ;;  %v1635_v5 = vmul.f32 %v1634_v3, %v2941_v49 }
0x1326   :  { %2714 = vtanh.f32 %v1635_v5 }
0x132e   :  { %v2713_v8 = vpop.eup %2712 }
0x132f   :  { %v1537_v47 = vmul.f32 %v2713_v8, %v2941_v49 }
0x1330   :  { %v2715_v9 = vpop.eup %2714 }
0x1331   :  { %v1538_v11 = vadd.f32 %v1537_v47, %v2945_v54  ;;  %v1637_v12 = vmul.f32 %v2715_v9, %v2941_v49 }
0x1333   :  { %1541 = vrot.lane.b32.xlu0 %v1538_v11, %s2760_s1  ;;  %v1638_v13 = vadd.f32 %v1637_v12, %v2945_v54  ;;  %v1539_v21 = vmul.f32 %v1538_v11, %v3200_v40 }
0x1335   :  { %1644 = vrot.lane.b32.xlu1 %v1638_v13, %s2760_s1  ;;  %v1642_v24 = vmul.f32 %v1640_v20, %v1638_v13 }
0x13a5   :  { %v1542_v15 = vpop.permute.xlu0 %1541 }
0x13a6   :  { %v1544_v16 = vmul.f32 %v1542_v15, %v1538_v11 }
0x13a7   :  { %v1645_v17 = vpop.permute.xlu1 %1644 }
0x13a8   :  { %v1647_v18 = vmul.f32 %v1645_v17, %v1638_v13  ;;  %1546 = vrot.lane.b32.xlu0 %v1544_v16, %s2762_s15 }
0x13aa   :  { %1649 = vrot.lane.b32.xlu1 %v1647_v18, %s2762_s15 }
0x141a   :  { %v1547_v22 = vpop.permute.xlu0 %1546 }
0x141b   :  { %v1549_v23 = vadd.f32 %v1547_v22, %v1539_v21 }
0x141c   :  { %v1650_v25 = vpop.permute.xlu1 %1649 }
0x141d   :  { %2716 = vtanh.f32 %v1549_v23  ;;  %v1652_v26 = vadd.f32 %v1650_v25, %v1642_v24 }
0x141f   :  { %2718 = vtanh.f32 %v1652_v26  ;;  %v1848_v58 = vrot.slane %v1652_v26, 6 }
0x1427   :  { %v2717_v27 = vpop.eup %2716 }
0x1428   :  { %1552 = vrot.lane.b32.xlu0 %v2717_v27, %s2760_s1 }
0x1429   :  { %v2719_v28 = vpop.eup %2718 }
0x142a   :  { %1655 = vrot.lane.b32.xlu1 %v2719_v28, %s2760_s1 }
0x149a   :  { %v1553_v29 = vpop.permute.xlu0 %1552 }
0x149b   :  { %v1555_v30 = vmul.f32 %v1553_v29, %v1538_v11 }
0x149c   :  { %v1656_v31 = vpop.permute.xlu1 %1655 }
0x149d   :  { %v1664_v32 = vrot.slane %v1555_v30, 4  ;;  %v1658_v33 = vmul.f32 %v1656_v31, %v1638_v13  ;;  %v1975_v30 = vld [vmem:[%s3320_s2 + $0x98] sm:$0xff] }
0x149f   :  { %1660 = vrot.lane.b32.xlu0 %v1658_v33, %s2762_s15  ;;  %1665 = vrot.lane.b32.xlu1 %v1664_v32, %s2760_s1  ;;  %v1764_v34 = vrot.slane %v1658_v33, 4 }
0x14a3   :  { %1765 = vrot.lane.b32.xlu0 %v1764_v34, %s2762_s15 }
0x1511   :  { %v1666_v35 = vpop.permute.xlu1 %1665  ;;  %v1661_v36 = vpop.permute.xlu0 %1660 }
0x1512   :  { %v1668_v37 = vsel %vm327_vm6, %v1661_v36, %v1666_v35  ;;  %v2093_v36 = vld [vmem:[%s3320_s2 + $0xa0] ss:$0 sm:$0xff] }
0x1513   :  { %v1670_v38 = vrot.slane %v1668_v37, 4 }
0x1515   :  { %2431 = vmatmul.mubr.msk.f32.vlgmr.msra.gmra.mrb[16].mxu0 %vm432_vm7, %v1670_v38  ;;  %v1766_v40 = vpop.permute.xlu0 %1765 }
0x1516   :  { %2442 = vmatmul.mubr.msk.f32.vlgmr.msra.gmra.mrb[16].mxu1 %vm327_vm6, %v1766_v40  ;;  %2471 = vmatprep.mubr.msk.f32.mxu0 %vm2765_vm1, %v2756_v7 }
0x1517   :  { %2636 = vmatpush3.bf16.msra.mxu1 %v2963_v4  ;;  %2460 = vmatprep.mubr.msk.f32.mxu1 %vm2765_vm1, %v2756_v7 }
0x1518   :  { %2637 = vmatprep.subr.bf16.mxu1 %v2764_v60 }
0x151b   :  { %2639 = vmatpush3.bf16.msra.mxu1 %v2969_v6 }
0x151c   :  { %2640 = vmatprep.subr.bf16.mxu1 %v2764_v60 }
0x151f   :  { %2642 = vmatpush3.bf16.msra.mxu1 %v2979_v10 }
0x1520   :  { %2643 = vmatprep.subr.bf16.mxu1 %v2764_v60 }
0x1523   :  { %2645 = vmatpush3.bf16.msra.mxu1 %v2990_v14 }
0x15e8   :  { %v1739_v41 = vpop.f32.mrb[16].mxu0 }
0x15e9   :  { %v1740_v42 = vadd.f32 %v3018_v19, %v1739_v41  ;;  %v2432_v43 = vpop.f32.mrb[17].mxu0  ;;  %v1835_v4 = vpop.f32.mrb[16].mxu1 }
0x15ea   :  { %v1840_v44 = vrot.slane %v1835_v4, 2  ;;  %v2443_v46 = vpop.f32.mrb[17].mxu1 }
0x15eb   :  { %v1743_v7 = vmul.f32 %v1740_v42, %v2941_v49 }
0x15ec   :  { %v1842_v48 = vadd.f32 %v1840_v44, %v2937_v45 }
0x15ed   :  { %2720 = vtanh.f32 %v1743_v7 }
0x15ee   :  { %v1843_v6 = vmul.f32 %v1842_v48, %v2941_v49 }
0x15f0   :  { %2722 = vtanh.f32 %v1843_v6 }
0x15f7   :  { %v2721_v10 = vpop.eup %2720 }
0x15f8   :  { %v1745_v50 = vmul.f32 %v2721_v10, %v2941_v49 }
0x15fa   :  { %v2723_v51 = vpop.eup %2722  ;;  %v1746_v14 = vadd.f32 %v1745_v50, %v2945_v54 }
0x15fb   :  { %v1845_v39 = vmul.f32 %v2723_v51, %v2941_v49 }
0x15fc   :  { %1749 = vrot.lane.b32.xlu1 %v1746_v14, %s2760_s1  ;;  %v1747_v57 = vmul.f32 %v1746_v14, %v1549_v23 }
0x15fd   :  { %v1846_v52 = vadd.f32 %v1845_v39, %v2945_v54 }
0x15ff   :  { %1852 = vrot.lane.b32.xlu0 %v1846_v52, %s2760_s1  ;;  %v1850_v62 = vmul.f32 %v1848_v58, %v1846_v52 }
0x166e   :  { %v1750_v53 = vpop.permute.xlu1 %1749 }
0x166f   :  { %v1752_v45 = vmul.f32 %v1750_v53, %v1746_v14 }
0x1671   :  { %1754 = vrot.lane.b32.xlu1 %v1752_v45, %s2762_s15  ;;  %v1853_v55 = vpop.permute.xlu0 %1852 }
0x1672   :  { %v1855_v56 = vmul.f32 %v1853_v55, %v1846_v52 }
0x1674   :  { %1857 = vrot.lane.b32.xlu0 %v1855_v56, %s2762_s15 }
0x16e3   :  { %v1755_v59 = vpop.permute.xlu1 %1754 }
0x16e4   :  { %v1757_v61 = vadd.f32 %v1755_v59, %v1747_v57 }
0x16e6   :  { %2724 = vtanh.f32 %v1757_v61  ;;  %v1858_v0 = vpop.permute.xlu0 %1857 }
0x16e7   :  { %v1860_v1 = vadd.f32 %v1858_v0, %v1850_v62 }
0x16e9   :  { %2726 = vtanh.f32 %v1860_v1 }
0x16f0   :  { %v2725_v2 = vpop.eup %2724 }
0x16f1   :  { %1760 = vrot.lane.b32.xlu1 %v2725_v2, %s2760_s1 }
0x16f3   :  { %v2727_v63 = vpop.eup %2726 }
0x16f4   :  { %1863 = vrot.lane.b32.xlu0 %v2727_v63, %s2760_s1 }
0x1763   :  { %v1761_v3 = vpop.permute.xlu1 %1760 }
0x1764   :  { %v1763_v5 = vmul.f32 %v1761_v3, %v1746_v14 }
0x1766   :  { %v1872_v8 = vrot.slane %v1763_v5, 2  ;;  %v1864_v47 = vpop.permute.xlu0 %1863 }
0x1767   :  { %v1866_v9 = vmul.f32 %v1864_v47, %v1846_v52 }
0x1768   :  { %1873 = vrot.lane.b32.xlu0 %v1872_v8, %s2760_s1 }
0x1769   :  { %1868 = vrot.lane.b32.xlu1 %v1866_v9, %s2762_s15 }
0x17da   :  { %v1874_v11 = vpop.permute.xlu0 %1873 }
0x17db   :  { %v1869_v12 = vpop.permute.xlu1 %1868 }
0x17dc   :  { %v1876_v13 = vsel %vm327_vm6, %v1869_v12, %v1874_v11 }
0x17dd   :  { %v1878_v15 = vrot.slane %v1876_v13, 6 }
0x17df   :  { %2461 = vmatmul.mubr.msk.f32.vlgmr.msra.gmra.mrb[18].mxu1 %vm432_vm7, %v1878_v15 }
0x18b2   :  { %v1947_v16 = vpop.f32.mrb[18].mxu1 }
0x18b3   :  { %v1948_v17 = vadd.f32 %v3018_v19, %v1947_v16  ;;  %v2462_v18 = vpop.f32.mrb[19].mxu1  ;;  %v1972_v19 = vld [vmem:[%s3320_s2 + $0x80] sm:$0xff] }
0x18b5   :  { %v1951_v20 = vmul.f32 %v1948_v17, %v2941_v49 }
0x18b7   :  { %2728 = vtanh.f32 %v1951_v20 }
0x18c1   :  { %v2729_v21 = vpop.eup %2728 }
0x18c2   :  { %v1953_v22 = vmul.f32 %v2729_v21, %v2941_v49  ;;  %v1973_v49 = vld [vmem:[%s3320_s2 + $0x88] sm:$0xff] }
0x18c3   :  { %v2647_v29 = vpack.c.bf16 %v1973_v49, %v1972_v19 }
0x18c4   :  { %v1954_v23 = vadd.f32 %v1953_v22, %v2945_v54  ;;  %v1974_v54 = vld [vmem:[%s3320_s2 + $0x90] sm:$0xff] }
0x18c5   :  { %2648 = vmatpush3.bf16.msra.mxu0 %v2647_v29  ;;  %v2650_v31 = vpack.c.bf16 %v1975_v30, %v1974_v54 }
0x18c6   :  { %1957 = vrot.lane.b32.xlu1 %v1954_v23, %s2760_s1  ;;  %v1955_v26 = vmul.f32 %v1954_v23, %v1757_v61  ;;  %2649 = vmatprep.subr.bf16.mxu0 %v2764_v60 }
0x18c9   :  { %2651 = vmatpush3.bf16.msra.mxu0 %v2650_v31 }
0x1938   :  { %v1958_v24 = vpop.permute.xlu1 %1957 }
0x1939   :  { %v1960_v25 = vmul.f32 %v1958_v24, %v1954_v23 }
0x193b   :  { %1962 = vrot.lane.b32.xlu0 %v1960_v25, %s2762_s15 }
0x19ad   :  { %v1963_v27 = vpop.permute.xlu0 %1962 }
0x19ae   :  { %v1965_v28 = vadd.f32 %v1963_v27, %v1955_v26 }
0x19b0   :  { %2730 = vtanh.f32 %v1965_v28 }
0x19ba   :  { %v2731_v32 = vpop.eup %2730 }
0x19bb   :  { %1968 = vrot.lane.b32.xlu1 %v2731_v32, %s2760_s1 }
0x1a2d   :  { %v1969_v33 = vpop.permute.xlu1 %1968 }
0x1a2e   :  { %v1971_v34 = vmul.f32 %v1969_v33, %v1954_v23 }
0x1a30   :  { %1982 = vrot.lane.b32.xlu0 %v1971_v34, %s2762_s15 }
0x1aa2   :  { %v1983_v35 = vpop.permute.xlu0 %1982 }
0x1aa3   :  { %2472 = vmatmul.mubr.msk.f32.vlgmr.msra.gmra.mrb[18].mxu0 %vm327_vm6, %v1983_v35 }
0x1b76   :  { %v2052_v37 = vpop.f32.mrb[18].mxu0 }
0x1b77   :  { %v2053_v38 = vadd.f32 %v2093_v36, %v2052_v37  ;;  %v2473_v60 = vpop.f32.mrb[19].mxu0 }
0x1b79   :  { %2056 = vst [vmem:[#allocation2] sm:$0x3] %v2053_v38 }
0x1b7a   :  { %2743 = shalt.err (!%p2740_p4)
}
0x1b7b   :  { %s2744_s8 = scalar_lea.hbm %s3321_s3, 32 }
0x1b7c   :  { %p2745_p5 = scmp.ne.s32.totalorder %s3321_s3, %s2744_s8  ;;  %p2748_p6 = scmp.lt.u32.totalorder %s2744_s8, %s3321_s3 }
0x1b7e   :  { %p2750_p7 = pnand %p2748_p6, %p2745_p5 }
0x1b80   :  { %2753 = shalt.err (!%p2750_p7)
}
0x1b81   :  { %2066 = dma.vmem_to_hbm [thread:$0]  %s2064_s6, 32, %s3321_s3, [#allocation3]  }
0x1b82   :  { %2754 = dma.done.wait [#allocation3], 32  }
0x1b83   :  { %2755 = vsyncadd [#allocation3], 4294967264 }
0x1b84   :  { %2070 = vsyncpa [#allocation3], 1 }

</bundles_post_ra>
